<compile_context>
chip_gen: v7x
topology: tpu7x:2x2x1
jax: 0.10.0
libtpu: 0.0.40
codegen_flags: <defaults>
</compile_context>

<pallas_src>
import functools

import jax
import jax.numpy as jnp
from jax.experimental import pallas as pl
from jax.experimental.pallas import tpu as pltpu


# ----------------------------- fused Pallas kernel -----------------------------

def _fused_attn_kernel(x_ref, wkv_ref, bkv_ref, wp_ref, bp_ref, o_ref, *,
                       num_heads, scale, partition_size):
    """One grid step = `bnp` partitions (bnp * P rows).

    x_ref   : (bnp*P, D)  bf16  shuffled tokens
    wkv_ref : (D, 2D)     bf16  [W_k | W_v] columns of the qkv weight (resident)
    bkv_ref : (1, 2D)     f32   matching bias (resident)
    wp_ref  : (D, D)      bf16  output projection weight (resident)
    bp_ref  : (1, D)      f32   output projection bias (resident)
    o_ref   : (bnp*P, D)  f32   projected attention output
    """
    BP, D = x_ref.shape
    P = partition_size
    B = BP // P
    Dh = D // num_heads

    # ---- fused KV projection on the MXU: (bnp*P, D) @ (D, 2D), bf16 -> f32 ----
    kv = jnp.dot(x_ref[...], wkv_ref[...], preferred_element_type=jnp.float32)
    kv = (kv + bkv_ref[...]).reshape(B, P, 2 * D)          # (B, P, 2D) f32

    k = kv[:, :, :D]                                       # (B, P, D) f32
    # Reference aliasing: q = k (the Q projection is dead).  Keep it this way.
    q_b = (k * scale).astype(jnp.bfloat16)                 # scale folded into query side
    k_b = k.astype(jnp.bfloat16)
    v_b = kv[:, :, D:].astype(jnp.bfloat16)

    # ---- per-head attention (static lane slices, bf16 MXU operands) ----
    head_outs = []
    for h in range(num_heads):
        sl = slice(h * Dh, (h + 1) * Dh)
        s = jnp.einsum("bqd,bkd->bqk", q_b[:, :, sl], k_b[:, :, sl],
                       preferred_element_type=jnp.float32)          # (B, P, P)
        s = s - jnp.max(s, axis=-1, keepdims=True)                   # softmax over keys
        p = jnp.exp(s)
        inv = pl.reciprocal(jnp.sum(p, axis=-1, keepdims=True), approx=True)
        p = (p * inv).astype(jnp.bfloat16)
        head_outs.append(jnp.einsum("bqk,bkd->bqd", p, v_b[:, :, sl],
                                    preferred_element_type=jnp.float32))

    # Single lane-dense concat (no per-head masked stores).
    o = jnp.concatenate(head_outs, axis=-1)                 # (B, P, D) f32
    o2 = o.reshape(BP, D).astype(jnp.bfloat16)

    # ---- fused output projection: (bnp*P, D) @ (D, D), bf16 -> f32 ----
    out = jnp.dot(o2, wp_ref[...], preferred_element_type=jnp.float32) + bp_ref[...]
    o_ref[...] = out.astype(o_ref.dtype)                    # one full-width store


# ----------------------------- tiling / wrapper ---------------------------------

def _fused_vmem_bytes(bnp, P, D):
    """Rough VMEM footprint (bytes) for one grid step (double-buffered I/O)."""
    rows = bnp * P
    bufs = 2 * rows * D * 2 + 2 * rows * D * 4                   # bf16 in + f32 out
    wts = 2 * (D * 2 * D * 2 + D * D * 2 + 3 * D * 4)            # resident weights/bias
    kv_tmp = rows * 2 * D * 4                                    # f32 KV intermediate
    attn_tmp = 4 * bnp * P * P * 4 + 3 * rows * D * 4            # scores/probs + head concat
    return bufs + wts + kv_tmp + attn_tmp


def _choose_bnp(NP, P, D, *, max_bnp=8, vmem_budget=40 << 20):
    """Largest divisor of NP that fits the VMEM budget and keeps >=2 grid steps."""
    best = 1
    for d in range(1, NP + 1):
        if NP % d or d > max_bnp:
            continue
        if NP >= 2 and NP // d < 2:       # keep 2+ steps so v7x's 2 TCs both work
            continue
        if _fused_vmem_bytes(d, P, D) > vmem_budget:
            continue
        best = d
    return best


def _fused_partition_attention(xg, w_kv, b_kv, w_p, b_p, *, num_heads,
                               partition_size, scale, out_dtype, max_bnp=8):
    """xg: (N*L, D) bf16 shuffled tokens.  Returns projected output (N*L, D)."""
    M, D = xg.shape
    P = partition_size
    NP = M // P
    bnp = _choose_bnp(NP, P, D, max_bnp=max_bnp)
    rows = bnp * P
    grid = (NP // bnp,)

    vmem = _fused_vmem_bytes(bnp, P, D)
    ce = pl.CostEstimate(
        flops=int(6 * M * D * D + 4 * M * P * D),
        transcendentals=int(M * num_heads * P),
        bytes_accessed=int(2 * M * D + 4 * M * D + 2 * (2 * D * D + D * D) + 12 * D),
    )

    return pl.pallas_call(
        functools.partial(_fused_attn_kernel, num_heads=num_heads,
                          scale=scale, partition_size=P),
        out_shape=jax.ShapeDtypeStruct((M, D), out_dtype),
        grid=grid,
        in_specs=[
            pl.BlockSpec((rows, D), lambda i: (i, 0)),        # shuffled tokens
            pl.BlockSpec((D, 2 * D), lambda i: (0, 0)),       # W_kv, VMEM-resident
            pl.BlockSpec((1, 2 * D), lambda i: (0, 0)),       # b_kv, resident
            pl.BlockSpec((D, D), lambda i: (0, 0)),           # W_proj, resident
            pl.BlockSpec((1, D), lambda i: (0, 0)),           # b_proj, resident
        ],
        out_specs=pl.BlockSpec((rows, D), lambda i: (i, 0)),
        compiler_params=pltpu.CompilerParams(
            dimension_semantics=("parallel",),                # shard partitions across TCs
            vmem_limit_bytes=int(min(max(32 << 20, vmem + (8 << 20)), 56 << 20)),
        ),
        cost_estimate=ce,
    )(xg, w_kv, b_kv, w_p, b_p)


# ------------------------------ module wrapper ----------------------------------

def init_params(key, dim, qkv_bias=False):
    k1, k2, k3 = jax.random.split(key, 3)
    return {
        "w_qkv": 0.02 * jax.random.normal(k1, (dim, 3 * dim), jnp.float32),
        "b_qkv": jnp.zeros((3 * dim,), jnp.float32),   # qkv_bias=False -> zeros
        "w_proj": 0.02 * jax.random.normal(k2, (dim, dim), jnp.float32),
        "b_proj": 0.02 * jax.random.normal(k3, (dim,), jnp.float32),
    }


def attention_partition_forward(
    x, params, *, num_heads, partition_size, scale, shuffle_key, q_shuffle=False
):
    N, L, D = x.shape
    P = partition_size
    assert L % P == 0 and D % num_heads == 0
    NP = N * L // P
    assert NP * P == N * L

    # Random per-batch token shuffle (matches torch.rand + argsort semantics).
    noise = jax.random.uniform(shuffle_key, (N, L), dtype=jnp.float32)
    ids_shuffle = jnp.argsort(noise, axis=-1)

    # The linear projections are per-token, so the gather commutes with them:
    # gather x (D-wide bf16 rows) instead of the projected KV (2D-wide f32).
    # TODO(synk): fold this gather into the fused kernel via scalar-prefetch
    # row DMAs to remove the remaining HBM pass over x.
    xg = jnp.take_along_axis(x.astype(jnp.bfloat16), ids_shuffle[:, :, None], axis=1)
    xg = xg.reshape(N * L, D)

    # q = k in the reference -> only the K,V columns of the qkv weight matter.
    w_kv = params["w_qkv"][:, D:].astype(jnp.bfloat16)       # (D, 2D)
    b_kv = params["b_qkv"][D:].reshape(1, 2 * D)             # (1, 2D) f32
    w_p = params["w_proj"].astype(jnp.bfloat16)              # (D, D)
    b_p = params["b_proj"].reshape(1, D)                     # (1, D) f32

    o = _fused_partition_attention(
        xg, w_kv, b_kv, w_p, b_p,
        num_heads=num_heads, partition_size=P, scale=scale, out_dtype=x.dtype)
    o = o.reshape(N, L, D)

    if q_shuffle:
        # Output projection is per-token, so it commutes with the un-shuffle.
        ids_rev = jnp.argsort(ids_shuffle, axis=-1)
        o = jnp.take_along_axis(o, ids_rev[:, :, None], axis=1)
    return o


# Pure-JAX f32 reference (full qkv matmul, same math) for validation.
def reference_forward(
    x, params, *, num_heads, partition_size, scale, shuffle_key, q_shuffle=False
):
    N, L, D = x.shape
    H = num_heads
    Dh = D // H
    P = partition_size
    NP = N * L // P

    qkv = x.reshape(N * L, D) @ params["w_qkv"] + params["b_qkv"]
    qkv = qkv.reshape(N, L, 3 * D)
    q, k, v = jnp.split(qkv, 3, axis=-1)

    noise = jax.random.uniform(shuffle_key, (N, L), dtype=jnp.float32)
    ids_shuffle = jnp.argsort(noise, axis=-1)
    gather = lambda a: jnp.take_along_axis(a, ids_shuffle[:, :, None], axis=1)
    k = gather(k)
    v = gather(v)

    kq = k.reshape(NP, P, H, Dh)   # reference: q = k
    vv = v.reshape(NP, P, H, Dh)
    attn = jnp.einsum("nqhd,nkhd->nqkh", kq, kq) * scale
    attn = jax.nn.softmax(attn, axis=-2)
    o = jnp.einsum("nqkh,nkhd->nqhd", attn, vv).reshape(N, L, D)
    if q_shuffle:
        ids_rev = jnp.argsort(ids_shuffle, axis=-1)
        o = jnp.take_along_axis(o, ids_rev[:, :, None], axis=1)
    out = o.reshape(N * L, D) @ params["w_proj"] + params["b_proj"]
    return out.reshape(N, L, D)


if __name__ == "__main__":
    # Small shapes consistent with the module: [N, L, D] with L % partition_size == 0.
    N, L, D = 2, 16, 32
    num_heads = 8
    partition_size = 8
    scale = (D // num_heads) ** -0.5   # qk_scale=None -> head_dim**-0.5

    root = jax.random.PRNGKey(0)
    k_param, k_x, k_shuf = jax.random.split(root, 3)

    params = init_params(k_param, D, qkv_bias=False)
    x = jax.random.normal(k_x, (N, L, D), jnp.float32)

    for q_shuffle in (False, True):
        out = attention_partition_forward(
            x, params,
            num_heads=num_heads, partition_size=partition_size,
            scale=scale, shuffle_key=k_shuf, q_shuffle=q_shuffle,
        )
        out = jax.block_until_ready(out)
        ref = reference_forward(
            x, params,
            num_heads=num_heads, partition_size=partition_size,
            scale=scale, shuffle_key=k_shuf, q_shuffle=q_shuffle,
        )
        assert out.shape == (N, L, D)
        # Normalized max error (bf16 matmuls + approx-reciprocal softmax).
        err = float(jnp.max(jnp.abs(out - ref)) / (jnp.max(jnp.abs(ref)) + 1e-8))
        assert err < 3e-2, f"mismatch (q_shuffle={q_shuffle}): rel err {err}"

    print("KERNEL_OK")
</pallas_src>

<mosaic_0001>
module attributes {stable_mosaic.version = 11 : i64} {
  func.func @_fused_attn_kernel(%arg0: i32, %arg1: memref<16x32xbf16, #tpu.memory_space<vmem>>, %arg2: memref<32x64xbf16, #tpu.memory_space<vmem>>, %arg3: memref<1x64xf32, #tpu.memory_space<vmem>>, %arg4: memref<32x32xbf16, #tpu.memory_space<vmem>>, %arg5: memref<1x32xf32, #tpu.memory_space<vmem>>, %arg6: memref<16x32xf32, #tpu.memory_space<vmem>>) attributes {dimension_semantics = [#tpu.dimension_semantics<parallel>], iteration_bounds = array<i64: 2>, scalar_prefetch = 0 : i64, scratch_operands = 0 : i64, tpu.core_type = #tpu.core_type<tc>, window_params = [{transform_indices = @transform_0, window_bounds = array<i64: 16, 32>}, {pipeline_mode = #tpu.pipeline_mode<synchronous>, transform_indices = @transform_1, window_bounds = array<i64: 32, 64>}, {pipeline_mode = #tpu.pipeline_mode<synchronous>, transform_indices = @transform_2, window_bounds = array<i64: 1, 64>}, {pipeline_mode = #tpu.pipeline_mode<synchronous>, transform_indices = @transform_3, window_bounds = array<i64: 32, 32>}, {pipeline_mode = #tpu.pipeline_mode<synchronous>, transform_indices = @transform_4, window_bounds = array<i64: 1, 32>}, {transform_indices = @transform_5, window_bounds = array<i64: 16, 32>}]} {
    %c0 = arith.constant 0 : index
    %c0_0 = arith.constant 0 : index
    %0 = vector.load %arg1[%c0, %c0_0] : memref<16x32xbf16, #tpu.memory_space<vmem>>, vector<16x32xbf16>
    %c0_1 = arith.constant 0 : index
    %c0_2 = arith.constant 0 : index
    %1 = vector.load %arg2[%c0_1, %c0_2] : memref<32x64xbf16, #tpu.memory_space<vmem>>, vector<32x64xbf16>
    %cst = arith.constant dense<0.000000e+00> : vector<16x64xf32>
    %2 = tpu.matmul %0, %1, %cst {dimension_numbers = #tpu.dot_dimension_numbers<[1], [0], [0], [1], [0, 0, 1, 1], [], []>} : vector<16x32xbf16>, vector<32x64xbf16>, vector<16x64xf32> -> vector<16x64xf32>
    %c0_3 = arith.constant 0 : index
    %c0_4 = arith.constant 0 : index
    %3 = vector.load %arg3[%c0_3, %c0_4] : memref<1x64xf32, #tpu.memory_space<vmem>>, vector<1x64xf32>
    %4 = vector.broadcast %3 : vector<1x64xf32> to vector<16x64xf32>
    %5 = arith.addf %2, %4 : vector<16x64xf32>
    %6 = vector.shape_cast %5 : vector<16x64xf32> to vector<2x8x64xf32>
    %7 = vector.extract_strided_slice %6 {offsets = [0, 0, 0], sizes = [2, 8, 32], strides = [1, 1, 1]} : vector<2x8x64xf32> to vector<2x8x32xf32>
    %cst_5 = arith.constant 5.000000e-01 : f32
    %8 = vector.broadcast %cst_5 : f32 to vector<2x8x32xf32>
    %9 = arith.mulf %7, %8 : vector<2x8x32xf32>
    %10 = arith.truncf %9 : vector<2x8x32xf32> to vector<2x8x32xbf16>
    %11 = arith.truncf %7 : vector<2x8x32xf32> to vector<2x8x32xbf16>
    %12 = vector.extract_strided_slice %6 {offsets = [0, 0, 32], sizes = [2, 8, 32], strides = [1, 1, 1]} : vector<2x8x64xf32> to vector<2x8x32xf32>
    %13 = arith.truncf %12 : vector<2x8x32xf32> to vector<2x8x32xbf16>
    %14 = vector.extract_strided_slice %10 {offsets = [0, 0, 0], sizes = [2, 8, 4], strides = [1, 1, 1]} : vector<2x8x32xbf16> to vector<2x8x4xbf16>
    %15 = vector.extract_strided_slice %11 {offsets = [0, 0, 0], sizes = [2, 8, 4], strides = [1, 1, 1]} : vector<2x8x32xbf16> to vector<2x8x4xbf16>
    "tpu.trace_start"() <{level = 10 : i32, message = "bqd,bkd->bqk"}> : () -> ()
    %cst_6 = arith.constant dense<0.000000e+00> : vector<2x8x8xf32>
    %16 = tpu.matmul %14, %15, %cst_6 {dimension_numbers = #tpu.dot_dimension_numbers<[2], [2], [1], [1], [0, 0, 0, 1, 1, 1], [0], [0]>} : vector<2x8x4xbf16>, vector<2x8x4xbf16>, vector<2x8x8xf32> -> vector<2x8x8xf32>
    "tpu.trace_stop"() : () -> ()
    %cst_7 = arith.constant dense<0xFF800000> : vector<2x8xf32>
    %17 = vector.multi_reduction <maximumf>, %16, %cst_7 [2] : vector<2x8x8xf32> to vector<2x8xf32>
    %18 = vector.shape_cast %17 : vector<2x8xf32> to vector<2x8x1xf32>
    %19 = vector.broadcast %18 : vector<2x8x1xf32> to vector<2x8x8xf32>
    %20 = arith.subf %16, %19 : vector<2x8x8xf32>
    %21 = math.exp %20 : vector<2x8x8xf32>
    %cst_8 = arith.constant dense<0.000000e+00> : vector<2x8xf32>
    %22 = vector.multi_reduction <add>, %21, %cst_8 [2] : vector<2x8x8xf32> to vector<2x8xf32>
    %23 = vector.shape_cast %22 : vector<2x8xf32> to vector<2x8x1xf32>
    %24 = tpu.reciprocal %23 {approx = true} : vector<2x8x1xf32> -> vector<2x8x1xf32>
    %25 = vector.broadcast %24 : vector<2x8x1xf32> to vector<2x8x8xf32>
    %26 = arith.mulf %21, %25 : vector<2x8x8xf32>
    %27 = arith.truncf %26 : vector<2x8x8xf32> to vector<2x8x8xbf16>
    %28 = vector.extract_strided_slice %13 {offsets = [0, 0, 0], sizes = [2, 8, 4], strides = [1, 1, 1]} : vector<2x8x32xbf16> to vector<2x8x4xbf16>
    "tpu.trace_start"() <{level = 10 : i32, message = "bqk,bkd->bqd"}> : () -> ()
    %cst_9 = arith.constant dense<0.000000e+00> : vector<2x8x4xf32>
    %29 = tpu.matmul %27, %28, %cst_9 {dimension_numbers = #tpu.dot_dimension_numbers<[2], [1], [1], [2], [0, 0, 0, 1, 1, 2], [0], [0]>} : vector<2x8x8xbf16>, vector<2x8x4xbf16>, vector<2x8x4xf32> -> vector<2x8x4xf32>
    "tpu.trace_stop"() : () -> ()
    %30 = vector.extract_strided_slice %10 {offsets = [0, 0, 4], sizes = [2, 8, 4], strides = [1, 1, 1]} : vector<2x8x32xbf16> to vector<2x8x4xbf16>
    %31 = vector.extract_strided_slice %11 {offsets = [0, 0, 4], sizes = [2, 8, 4], strides = [1, 1, 1]} : vector<2x8x32xbf16> to vector<2x8x4xbf16>
    "tpu.trace_start"() <{level = 10 : i32, message = "bqd,bkd->bqk"}> : () -> ()
    %cst_10 = arith.constant dense<0.000000e+00> : vector<2x8x8xf32>
    %32 = tpu.matmul %30, %31, %cst_10 {dimension_numbers = #tpu.dot_dimension_numbers<[2], [2], [1], [1], [0, 0, 0, 1, 1, 1], [0], [0]>} : vector<2x8x4xbf16>, vector<2x8x4xbf16>, vector<2x8x8xf32> -> vector<2x8x8xf32>
    "tpu.trace_stop"() : () -> ()
    %cst_11 = arith.constant dense<0xFF800000> : vector<2x8xf32>
    %33 = vector.multi_reduction <maximumf>, %32, %cst_11 [2] : vector<2x8x8xf32> to vector<2x8xf32>
    %34 = vector.shape_cast %33 : vector<2x8xf32> to vector<2x8x1xf32>
    %35 = vector.broadcast %34 : vector<2x8x1xf32> to vector<2x8x8xf32>
    %36 = arith.subf %32, %35 : vector<2x8x8xf32>
    %37 = math.exp %36 : vector<2x8x8xf32>
    %cst_12 = arith.constant dense<0.000000e+00> : vector<2x8xf32>
    %38 = vector.multi_reduction <add>, %37, %cst_12 [2] : vector<2x8x8xf32> to vector<2x8xf32>
    %39 = vector.shape_cast %38 : vector<2x8xf32> to vector<2x8x1xf32>
    %40 = tpu.reciprocal %39 {approx = true} : vector<2x8x1xf32> -> vector<2x8x1xf32>
    %41 = vector.broadcast %40 : vector<2x8x1xf32> to vector<2x8x8xf32>
    %42 = arith.mulf %37, %41 : vector<2x8x8xf32>
    %43 = arith.truncf %42 : vector<2x8x8xf32> to vector<2x8x8xbf16>
    %44 = vector.extract_strided_slice %13 {offsets = [0, 0, 4], sizes = [2, 8, 4], strides = [1, 1, 1]} : vector<2x8x32xbf16> to vector<2x8x4xbf16>
    "tpu.trace_start"() <{level = 10 : i32, message = "bqk,bkd->bqd"}> : () -> ()
    %cst_13 = arith.constant dense<0.000000e+00> : vector<2x8x4xf32>
    %45 = tpu.matmul %43, %44, %cst_13 {dimension_numbers = #tpu.dot_dimension_numbers<[2], [1], [1], [2], [0, 0, 0, 1, 1, 2], [0], [0]>} : vector<2x8x8xbf16>, vector<2x8x4xbf16>, vector<2x8x4xf32> -> vector<2x8x4xf32>
    "tpu.trace_stop"() : () -> ()
    %46 = vector.extract_strided_slice %10 {offsets = [0, 0, 8], sizes = [2, 8, 4], strides = [1, 1, 1]} : vector<2x8x32xbf16> to vector<2x8x4xbf16>
    %47 = vector.extract_strided_slice %11 {offsets = [0, 0, 8], sizes = [2, 8, 4], strides = [1, 1, 1]} : vector<2x8x32xbf16> to vector<2x8x4xbf16>
    "tpu.trace_start"() <{level = 10 : i32, message = "bqd,bkd->bqk"}> : () -> ()
    %cst_14 = arith.constant dense<0.000000e+00> : vector<2x8x8xf32>
    %48 = tpu.matmul %46, %47, %cst_14 {dimension_numbers = #tpu.dot_dimension_numbers<[2], [2], [1], [1], [0, 0, 0, 1, 1, 1], [0], [0]>} : vector<2x8x4xbf16>, vector<2x8x4xbf16>, vector<2x8x8xf32> -> vector<2x8x8xf32>
    "tpu.trace_stop"() : () -> ()
    %cst_15 = arith.constant dense<0xFF800000> : vector<2x8xf32>
    %49 = vector.multi_reduction <maximumf>, %48, %cst_15 [2] : vector<2x8x8xf32> to vector<2x8xf32>
    %50 = vector.shape_cast %49 : vector<2x8xf32> to vector<2x8x1xf32>
    %51 = vector.broadcast %50 : vector<2x8x1xf32> to vector<2x8x8xf32>
    %52 = arith.subf %48, %51 : vector<2x8x8xf32>
    %53 = math.exp %52 : vector<2x8x8xf32>
    %cst_16 = arith.constant dense<0.000000e+00> : vector<2x8xf32>
    %54 = vector.multi_reduction <add>, %53, %cst_16 [2] : vector<2x8x8xf32> to vector<2x8xf32>
    %55 = vector.shape_cast %54 : vector<2x8xf32> to vector<2x8x1xf32>
    %56 = tpu.reciprocal %55 {approx = true} : vector<2x8x1xf32> -> vector<2x8x1xf32>
    %57 = vector.broadcast %56 : vector<2x8x1xf32> to vector<2x8x8xf32>
    %58 = arith.mulf %53, %57 : vector<2x8x8xf32>
    %59 = arith.truncf %58 : vector<2x8x8xf32> to vector<2x8x8xbf16>
    %60 = vector.extract_strided_slice %13 {offsets = [0, 0, 8], sizes = [2, 8, 4], strides = [1, 1, 1]} : vector<2x8x32xbf16> to vector<2x8x4xbf16>
    "tpu.trace_start"() <{level = 10 : i32, message = "bqk,bkd->bqd"}> : () -> ()
    %cst_17 = arith.constant dense<0.000000e+00> : vector<2x8x4xf32>
    %61 = tpu.matmul %59, %60, %cst_17 {dimension_numbers = #tpu.dot_dimension_numbers<[2], [1], [1], [2], [0, 0, 0, 1, 1, 2], [0], [0]>} : vector<2x8x8xbf16>, vector<2x8x4xbf16>, vector<2x8x4xf32> -> vector<2x8x4xf32>
    "tpu.trace_stop"() : () -> ()
    %62 = vector.extract_strided_slice %10 {offsets = [0, 0, 12], sizes = [2, 8, 4], strides = [1, 1, 1]} : vector<2x8x32xbf16> to vector<2x8x4xbf16>
    %63 = vector.extract_strided_slice %11 {offsets = [0, 0, 12], sizes = [2, 8, 4], strides = [1, 1, 1]} : vector<2x8x32xbf16> to vector<2x8x4xbf16>
    "tpu.trace_start"() <{level = 10 : i32, message = "bqd,bkd->bqk"}> : () -> ()
    %cst_18 = arith.constant dense<0.000000e+00> : vector<2x8x8xf32>
    %64 = tpu.matmul %62, %63, %cst_18 {dimension_numbers = #tpu.dot_dimension_numbers<[2], [2], [1], [1], [0, 0, 0, 1, 1, 1], [0], [0]>} : vector<2x8x4xbf16>, vector<2x8x4xbf16>, vector<2x8x8xf32> -> vector<2x8x8xf32>
    "tpu.trace_stop"() : () -> ()
    %cst_19 = arith.constant dense<0xFF800000> : vector<2x8xf32>
    %65 = vector.multi_reduction <maximumf>, %64, %cst_19 [2] : vector<2x8x8xf32> to vector<2x8xf32>
    %66 = vector.shape_cast %65 : vector<2x8xf32> to vector<2x8x1xf32>
    %67 = vector.broadcast %66 : vector<2x8x1xf32> to vector<2x8x8xf32>
    %68 = arith.subf %64, %67 : vector<2x8x8xf32>
    %69 = math.exp %68 : vector<2x8x8xf32>
    %cst_20 = arith.constant dense<0.000000e+00> : vector<2x8xf32>
    %70 = vector.multi_reduction <add>, %69, %cst_20 [2] : vector<2x8x8xf32> to vector<2x8xf32>
    %71 = vector.shape_cast %70 : vector<2x8xf32> to vector<2x8x1xf32>
    %72 = tpu.reciprocal %71 {approx = true} : vector<2x8x1xf32> -> vector<2x8x1xf32>
    %73 = vector.broadcast %72 : vector<2x8x1xf32> to vector<2x8x8xf32>
    %74 = arith.mulf %69, %73 : vector<2x8x8xf32>
    %75 = arith.truncf %74 : vector<2x8x8xf32> to vector<2x8x8xbf16>
    %76 = vector.extract_strided_slice %13 {offsets = [0, 0, 12], sizes = [2, 8, 4], strides = [1, 1, 1]} : vector<2x8x32xbf16> to vector<2x8x4xbf16>
    "tpu.trace_start"() <{level = 10 : i32, message = "bqk,bkd->bqd"}> : () -> ()
    %cst_21 = arith.constant dense<0.000000e+00> : vector<2x8x4xf32>
    %77 = tpu.matmul %75, %76, %cst_21 {dimension_numbers = #tpu.dot_dimension_numbers<[2], [1], [1], [2], [0, 0, 0, 1, 1, 2], [0], [0]>} : vector<2x8x8xbf16>, vector<2x8x4xbf16>, vector<2x8x4xf32> -> vector<2x8x4xf32>
    "tpu.trace_stop"() : () -> ()
    %78 = vector.extract_strided_slice %10 {offsets = [0, 0, 16], sizes = [2, 8, 4], strides = [1, 1, 1]} : vector<2x8x32xbf16> to vector<2x8x4xbf16>
    %79 = vector.extract_strided_slice %11 {offsets = [0, 0, 16], sizes = [2, 8, 4], strides = [1, 1, 1]} : vector<2x8x32xbf16> to vector<2x8x4xbf16>
    "tpu.trace_start"() <{level = 10 : i32, message = "bqd,bkd->bqk"}> : () -> ()
    %cst_22 = arith.constant dense<0.000000e+00> : vector<2x8x8xf32>
    %80 = tpu.matmul %78, %79, %cst_22 {dimension_numbers = #tpu.dot_dimension_numbers<[2], [2], [1], [1], [0, 0, 0, 1, 1, 1], [0], [0]>} : vector<2x8x4xbf16>, vector<2x8x4xbf16>, vector<2x8x8xf32> -> vector<2x8x8xf32>
    "tpu.trace_stop"() : () -> ()
    %cst_23 = arith.constant dense<0xFF800000> : vector<2x8xf32>
    %81 = vector.multi_reduction <maximumf>, %80, %cst_23 [2] : vector<2x8x8xf32> to vector<2x8xf32>
    %82 = vector.shape_cast %81 : vector<2x8xf32> to vector<2x8x1xf32>
    %83 = vector.broadcast %82 : vector<2x8x1xf32> to vector<2x8x8xf32>
    %84 = arith.subf %80, %83 : vector<2x8x8xf32>
    %85 = math.exp %84 : vector<2x8x8xf32>
    %cst_24 = arith.constant dense<0.000000e+00> : vector<2x8xf32>
    %86 = vector.multi_reduction <add>, %85, %cst_24 [2] : vector<2x8x8xf32> to vector<2x8xf32>
    %87 = vector.shape_cast %86 : vector<2x8xf32> to vector<2x8x1xf32>
    %88 = tpu.reciprocal %87 {approx = true} : vector<2x8x1xf32> -> vector<2x8x1xf32>
    %89 = vector.broadcast %88 : vector<2x8x1xf32> to vector<2x8x8xf32>
    %90 = arith.mulf %85, %89 : vector<2x8x8xf32>
    %91 = arith.truncf %90 : vector<2x8x8xf32> to vector<2x8x8xbf16>
    %92 = vector.extract_strided_slice %13 {offsets = [0, 0, 16], sizes = [2, 8, 4], strides = [1, 1, 1]} : vector<2x8x32xbf16> to vector<2x8x4xbf16>
    "tpu.trace_start"() <{level = 10 : i32, message = "bqk,bkd->bqd"}> : () -> ()
    %cst_25 = arith.constant dense<0.000000e+00> : vector<2x8x4xf32>
    %93 = tpu.matmul %91, %92, %cst_25 {dimension_numbers = #tpu.dot_dimension_numbers<[2], [1], [1], [2], [0, 0, 0, 1, 1, 2], [0], [0]>} : vector<2x8x8xbf16>, vector<2x8x4xbf16>, vector<2x8x4xf32> -> vector<2x8x4xf32>
    "tpu.trace_stop"() : () -> ()
    %94 = vector.extract_strided_slice %10 {offsets = [0, 0, 20], sizes = [2, 8, 4], strides = [1, 1, 1]} : vector<2x8x32xbf16> to vector<2x8x4xbf16>
    %95 = vector.extract_strided_slice %11 {offsets = [0, 0, 20], sizes = [2, 8, 4], strides = [1, 1, 1]} : vector<2x8x32xbf16> to vector<2x8x4xbf16>
    "tpu.trace_start"() <{level = 10 : i32, message = "bqd,bkd->bqk"}> : () -> ()
    %cst_26 = arith.constant dense<0.000000e+00> : vector<2x8x8xf32>
    %96 = tpu.matmul %94, %95, %cst_26 {dimension_numbers = #tpu.dot_dimension_numbers<[2], [2], [1], [1], [0, 0, 0, 1, 1, 1], [0], [0]>} : vector<2x8x4xbf16>, vector<2x8x4xbf16>, vector<2x8x8xf32> -> vector<2x8x8xf32>
    "tpu.trace_stop"() : () -> ()
    %cst_27 = arith.constant dense<0xFF800000> : vector<2x8xf32>
    %97 = vector.multi_reduction <maximumf>, %96, %cst_27 [2] : vector<2x8x8xf32> to vector<2x8xf32>
    %98 = vector.shape_cast %97 : vector<2x8xf32> to vector<2x8x1xf32>
    %99 = vector.broadcast %98 : vector<2x8x1xf32> to vector<2x8x8xf32>
    %100 = arith.subf %96, %99 : vector<2x8x8xf32>
    %101 = math.exp %100 : vector<2x8x8xf32>
    %cst_28 = arith.constant dense<0.000000e+00> : vector<2x8xf32>
    %102 = vector.multi_reduction <add>, %101, %cst_28 [2] : vector<2x8x8xf32> to vector<2x8xf32>
    %103 = vector.shape_cast %102 : vector<2x8xf32> to vector<2x8x1xf32>
    %104 = tpu.reciprocal %103 {approx = true} : vector<2x8x1xf32> -> vector<2x8x1xf32>
    %105 = vector.broadcast %104 : vector<2x8x1xf32> to vector<2x8x8xf32>
    %106 = arith.mulf %101, %105 : vector<2x8x8xf32>
    %107 = arith.truncf %106 : vector<2x8x8xf32> to vector<2x8x8xbf16>
    %108 = vector.extract_strided_slice %13 {offsets = [0, 0, 20], sizes = [2, 8, 4], strides = [1, 1, 1]} : vector<2x8x32xbf16> to vector<2x8x4xbf16>
    "tpu.trace_start"() <{level = 10 : i32, message = "bqk,bkd->bqd"}> : () -> ()
    %cst_29 = arith.constant dense<0.000000e+00> : vector<2x8x4xf32>
    %109 = tpu.matmul %107, %108, %cst_29 {dimension_numbers = #tpu.dot_dimension_numbers<[2], [1], [1], [2], [0, 0, 0, 1, 1, 2], [0], [0]>} : vector<2x8x8xbf16>, vector<2x8x4xbf16>, vector<2x8x4xf32> -> vector<2x8x4xf32>
    "tpu.trace_stop"() : () -> ()
    %110 = vector.extract_strided_slice %10 {offsets = [0, 0, 24], sizes = [2, 8, 4], strides = [1, 1, 1]} : vector<2x8x32xbf16> to vector<2x8x4xbf16>
    %111 = vector.extract_strided_slice %11 {offsets = [0, 0, 24], sizes = [2, 8, 4], strides = [1, 1, 1]} : vector<2x8x32xbf16> to vector<2x8x4xbf16>
    "tpu.trace_start"() <{level = 10 : i32, message = "bqd,bkd->bqk"}> : () -> ()
    %cst_30 = arith.constant dense<0.000000e+00> : vector<2x8x8xf32>
    %112 = tpu.matmul %110, %111, %cst_30 {dimension_numbers = #tpu.dot_dimension_numbers<[2], [2], [1], [1], [0, 0, 0, 1, 1, 1], [0], [0]>} : vector<2x8x4xbf16>, vector<2x8x4xbf16>, vector<2x8x8xf32> -> vector<2x8x8xf32>
    "tpu.trace_stop"() : () -> ()
    %cst_31 = arith.constant dense<0xFF800000> : vector<2x8xf32>
    %113 = vector.multi_reduction <maximumf>, %112, %cst_31 [2] : vector<2x8x8xf32> to vector<2x8xf32>
    %114 = vector.shape_cast %113 : vector<2x8xf32> to vector<2x8x1xf32>
    %115 = vector.broadcast %114 : vector<2x8x1xf32> to vector<2x8x8xf32>
    %116 = arith.subf %112, %115 : vector<2x8x8xf32>
    %117 = math.exp %116 : vector<2x8x8xf32>
    %cst_32 = arith.constant dense<0.000000e+00> : vector<2x8xf32>
    %118 = vector.multi_reduction <add>, %117, %cst_32 [2] : vector<2x8x8xf32> to vector<2x8xf32>
    %119 = vector.shape_cast %118 : vector<2x8xf32> to vector<2x8x1xf32>
    %120 = tpu.reciprocal %119 {approx = true} : vector<2x8x1xf32> -> vector<2x8x1xf32>
    %121 = vector.broadcast %120 : vector<2x8x1xf32> to vector<2x8x8xf32>
    %122 = arith.mulf %117, %121 : vector<2x8x8xf32>
    %123 = arith.truncf %122 : vector<2x8x8xf32> to vector<2x8x8xbf16>
    %124 = vector.extract_strided_slice %13 {offsets = [0, 0, 24], sizes = [2, 8, 4], strides = [1, 1, 1]} : vector<2x8x32xbf16> to vector<2x8x4xbf16>
    "tpu.trace_start"() <{level = 10 : i32, message = "bqk,bkd->bqd"}> : () -> ()
    %cst_33 = arith.constant dense<0.000000e+00> : vector<2x8x4xf32>
    %125 = tpu.matmul %123, %124, %cst_33 {dimension_numbers = #tpu.dot_dimension_numbers<[2], [1], [1], [2], [0, 0, 0, 1, 1, 2], [0], [0]>} : vector<2x8x8xbf16>, vector<2x8x4xbf16>, vector<2x8x4xf32> -> vector<2x8x4xf32>
    "tpu.trace_stop"() : () -> ()
    %126 = vector.extract_strided_slice %10 {offsets = [0, 0, 28], sizes = [2, 8, 4], strides = [1, 1, 1]} : vector<2x8x32xbf16> to vector<2x8x4xbf16>
    %127 = vector.extract_strided_slice %11 {offsets = [0, 0, 28], sizes = [2, 8, 4], strides = [1, 1, 1]} : vector<2x8x32xbf16> to vector<2x8x4xbf16>
    "tpu.trace_start"() <{level = 10 : i32, message = "bqd,bkd->bqk"}> : () -> ()
    %cst_34 = arith.constant dense<0.000000e+00> : vector<2x8x8xf32>
    %128 = tpu.matmul %126, %127, %cst_34 {dimension_numbers = #tpu.dot_dimension_numbers<[2], [2], [1], [1], [0, 0, 0, 1, 1, 1], [0], [0]>} : vector<2x8x4xbf16>, vector<2x8x4xbf16>, vector<2x8x8xf32> -> vector<2x8x8xf32>
    "tpu.trace_stop"() : () -> ()
    %cst_35 = arith.constant dense<0xFF800000> : vector<2x8xf32>
    %129 = vector.multi_reduction <maximumf>, %128, %cst_35 [2] : vector<2x8x8xf32> to vector<2x8xf32>
    %130 = vector.shape_cast %129 : vector<2x8xf32> to vector<2x8x1xf32>
    %131 = vector.broadcast %130 : vector<2x8x1xf32> to vector<2x8x8xf32>
    %132 = arith.subf %128, %131 : vector<2x8x8xf32>
    %133 = math.exp %132 : vector<2x8x8xf32>
    %cst_36 = arith.constant dense<0.000000e+00> : vector<2x8xf32>
    %134 = vector.multi_reduction <add>, %133, %cst_36 [2] : vector<2x8x8xf32> to vector<2x8xf32>
    %135 = vector.shape_cast %134 : vector<2x8xf32> to vector<2x8x1xf32>
    %136 = tpu.reciprocal %135 {approx = true} : vector<2x8x1xf32> -> vector<2x8x1xf32>
    %137 = vector.broadcast %136 : vector<2x8x1xf32> to vector<2x8x8xf32>
    %138 = arith.mulf %133, %137 : vector<2x8x8xf32>
    %139 = arith.truncf %138 : vector<2x8x8xf32> to vector<2x8x8xbf16>
    %140 = vector.extract_strided_slice %13 {offsets = [0, 0, 28], sizes = [2, 8, 4], strides = [1, 1, 1]} : vector<2x8x32xbf16> to vector<2x8x4xbf16>
    "tpu.trace_start"() <{level = 10 : i32, message = "bqk,bkd->bqd"}> : () -> ()
    %cst_37 = arith.constant dense<0.000000e+00> : vector<2x8x4xf32>
    %141 = tpu.matmul %139, %140, %cst_37 {dimension_numbers = #tpu.dot_dimension_numbers<[2], [1], [1], [2], [0, 0, 0, 1, 1, 2], [0], [0]>} : vector<2x8x8xbf16>, vector<2x8x4xbf16>, vector<2x8x4xf32> -> vector<2x8x4xf32>
    "tpu.trace_stop"() : () -> ()
    %142 = tpu.concatenate %29, %45, %61, %77, %93, %109, %125, %141 in 2 : vector<2x8x4xf32>, vector<2x8x4xf32>, vector<2x8x4xf32>, vector<2x8x4xf32>, vector<2x8x4xf32>, vector<2x8x4xf32>, vector<2x8x4xf32>, vector<2x8x4xf32> -> vector<2x8x32xf32>
    %143 = vector.shape_cast %142 : vector<2x8x32xf32> to vector<16x32xf32>
    %144 = arith.truncf %143 : vector<16x32xf32> to vector<16x32xbf16>
    %c0_38 = arith.constant 0 : index
    %c0_39 = arith.constant 0 : index
    %145 = vector.load %arg4[%c0_38, %c0_39] : memref<32x32xbf16, #tpu.memory_space<vmem>>, vector<32x32xbf16>
    %cst_40 = arith.constant dense<0.000000e+00> : vector<16x32xf32>
    %146 = tpu.matmul %144, %145, %cst_40 {dimension_numbers = #tpu.dot_dimension_numbers<[1], [0], [0], [1], [0, 0, 1, 1], [], []>} : vector<16x32xbf16>, vector<32x32xbf16>, vector<16x32xf32> -> vector<16x32xf32>
    %c0_41 = arith.constant 0 : index
    %c0_42 = arith.constant 0 : index
    %147 = vector.load %arg5[%c0_41, %c0_42] : memref<1x32xf32, #tpu.memory_space<vmem>>, vector<1x32xf32>
    %148 = vector.broadcast %147 : vector<1x32xf32> to vector<16x32xf32>
    %149 = arith.addf %146, %148 : vector<16x32xf32>
    %c0_43 = arith.constant 0 : index
    %c0_44 = arith.constant 0 : index
    %150 = vector.load %arg6[%c0_43, %c0_44] : memref<16x32xf32, #tpu.memory_space<vmem>>, vector<16x32xf32>
    tpu.vector_store %arg6[%c0_43, %c0_44], %149 {strides = array<i32>} : memref<16x32xf32, #tpu.memory_space<vmem>>, vector<16x32xf32>,
    return
  }
  func.func @transform_0(%arg0: i32) -> (i32, i32) {
    %c0_i32 = arith.constant 0 : i32
    %c0_i32_0 = arith.constant 0 : i32
    return %arg0, %c0_i32 : i32, i32
  }
  func.func @transform_1(%arg0: i32) -> (i32, i32) {
    %c0_i32 = arith.constant 0 : i32
    %c0_i32_0 = arith.constant 0 : i32
    %c0_i32_1 = arith.constant 0 : i32
    return %c0_i32, %c0_i32_0 : i32, i32
  }
  func.func @transform_2(%arg0: i32) -> (i32, i32) {
    %c0_i32 = arith.constant 0 : i32
    %c0_i32_0 = arith.constant 0 : i32
    %c0_i32_1 = arith.constant 0 : i32
    return %c0_i32, %c0_i32_0 : i32, i32
  }
  func.func @transform_3(%arg0: i32) -> (i32, i32) {
    %c0_i32 = arith.constant 0 : i32
    %c0_i32_0 = arith.constant 0 : i32
    %c0_i32_1 = arith.constant 0 : i32
    return %c0_i32, %c0_i32_0 : i32, i32
  }
  func.func @transform_4(%arg0: i32) -> (i32, i32) {
    %c0_i32 = arith.constant 0 : i32
    %c0_i32_0 = arith.constant 0 : i32
    %c0_i32_1 = arith.constant 0 : i32
    return %c0_i32, %c0_i32_0 : i32, i32
  }
  func.func @transform_5(%arg0: i32) -> (i32, i32) {
    %c0_i32 = arith.constant 0 : i32
    %c0_i32_0 = arith.constant 0 : i32
    return %arg0, %c0_i32 : i32, i32
  }
}

</mosaic_0001>

<bundles_post_ra>
// kernel: tpu_custom_call.1
= control target key start
LH: loop header
LB: loop body
LE: loop exit
PB: predicated region body
PF: predicated region fallthrough
CT: control target
= control target key end

     0   :  { %10 = vsyncpa [#allocation3], 0  ;;  %s3695_s0 = inlined_call_operand.hbm [shape: bf16[32,32], index: 0, kind: input, shape index: {}]   ;;  %s3696_s1 = inlined_call_operand.hbm [shape: bf16[32,64], index: 1, kind: input, shape index: {}]   ;;  %s3697_s2 = inlined_call_operand.vmem [shape: f32[1,64], index: 2, kind: input, shape index: {}]   ;;  %s3698_s3 = inlined_call_operand.hbm [shape: bf16[32,32], index: 3, kind: input, shape index: {}]   ;;  %s3699_s4 = inlined_call_operand.vmem [shape: f32[1,32], index: 4, kind: input, shape index: {}]   ;;  %s3700_s5 = inlined_call_operand.hbm [shape: f32[32,32], index: 5, kind: output, shape index: {}]  }
   0x1   :  { %12 = vsyncpa [#allocation3 + $0x1], 0 }
   0x2   :  { %13 = vsyncpa [#allocation6], 0 }
   0x3   :  { %14 = vsyncpa [#allocation4], 0 }
   0x4   :  { %16 = vsyncpa [#allocation4 + $0x1], 0  ;;  %s3122_s18 = smov 0   ;;  %s3124_s19 = smov 0  }
   0x5   :  { %s3126_s20 = smov 0   ;;  %s3128_s21 = smov 0  }
   0x6 LB: > { %s3143_s22 = sadd.s32 4294967295, %s3059_s21   ;;  %s2366_s23 = sadd.s32 4294967294, %s3059_s21   ;;  %s3059_s21 = sphi %s3128_s21, %s3720_s21   ;;  %s3055_s20 = sphi %s3126_s20, %s3719_s20   ;;  %s3051_s19 = sphi %s3124_s19, %s3718_s19   ;;  %s3047_s18 = sphi %s3122_s18, %s3717_s18  }
   0x7   : > { %p42_p0 = scmp.ne.s32.totalorder %s3051_s19, %s3047_s18  ;;  %p3701_p1 = scmp.eq.s32.totalorder %s3143_s22, 0 }
   0x8   : > { %p156_p3 = scmp.eq.s32.totalorder %s2366_s23, 1  ;;  %p2367_p5 = scmp.ge.s32.totalorder %s3059_s21, 1 }
   0x9   : > { %p3152_p4 = por %p3701_p1, %p42_p0  ;;  %p163_p7 = scmp.lt.s32.totalorder %s3059_s21, 3 }
   0xa   : > { %p3157_p6 = por %p156_p3, %p42_p0  ;;  %s3061_s27 = smov [#allocation5]  }
   0xb   : > { %s3704_s24 = scalar_select %p3152_p4, 1, 0 }
   0xc   : > { %s3705_s25 = scalar_select %p3157_p6, 1, 0 }
   0xd   : > { %p3162_p8 = pnand %p2367_p5, %p163_p7  ;;  %s175_s28 = sshll.u32 %s3061_s27, 4  ;;  %s3166_s28 = int_to_ptr.vmem [resolvable:$true] %s175_s28 }
   0xe   : > { %s3062_s30 = smov [#allocation7]   ;;  %s2903_s9 = scalar_lea.hbm %s3696_s1, 256 }
   0xf   : > { %p2717_p9 = pneg %p3162_p8  ;;  %s191_s6 = sshll.u32 %s3062_s30, 4  ;;  %s3177_s6 = int_to_ptr.vmem [resolvable:$true] %s191_s6 }
  0x10   : > { %p2904_p12 = scmp.ne.s32.totalorder %s3696_s1, %s2903_s9  ;;  %p2910_p5 = scmp.lt.u32.totalorder %s2903_s9, %s3696_s1 }
  0x11   : > { %p3173_p11 = pnand %p2717_p9, %p3701_p1 }
  0x13   : > { %p2905_p13 = pneg %p3173_p11 }
  0x15   : > { %p2906_p0 = pnand %p2905_p13, %p2904_p12 }
  0x17   : > { %p2907_p3 = pneg %p2906_p0 }
  0x19   : > { %p2912_p7 = pnand %p2910_p5, %p2907_p3 }
  0x1b   : > { %2915 = shalt.err (!%p2912_p7)
}
  0x1c   : > { %s2916_s14 = scalar_lea.vmem %s3166_s28, 256  ;;  %p2924_p2 = scmp.lt.s32.totalorder %s3166_s28, %s3166_s28 }
  0x1d   : > { %p2917_p9 = scmp.ne.s32.totalorder %s3166_s28, %s2916_s14  ;;  %p2925_p12 = scmp.lt.s32.totalorder %s2916_s14, %s2916_s14 }
  0x1f   : > { %p2919_p10 = pnand %p2917_p9, %p2905_p13  ;;  %p2926_p0 = por %p2925_p12, %p2924_p2 }
  0x21   : > { %p2920_p1 = pneg %p2919_p10 }
  0x23   : > { %p2927_p6 = pnand %p2926_p0, %p2920_p1 }
  0x25   : > { %2930 = shalt.err (!%p2927_p6)
}
  0x26   : > { %s3063_s15 = smov 64   ;;  %s3064_s16 = smov 4  }
  0x27   : > { %2720 = dma.hbm_to_vmem [thread:$0]  (!%p3173_p11), %s3696_s1, 256, %s3166_s28, [#allocation6], %s3063_s15, %s3063_s15, %s3064_s16  }
  0x28   : > { %s2931_s7 = scalar_lea.hbm %s3698_s3, 256 }
  0x29   : > { %p2932_p1 = scmp.ne.s32.totalorder %s3698_s3, %s2931_s7  ;;  %p2938_p10 = scmp.lt.u32.totalorder %s2931_s7, %s3698_s3 }
  0x2b   : > { %p2934_p2 = pnand %p2932_p1, %p2905_p13 }
  0x2d   : > { %p2935_p6 = pneg %p2934_p2 }
  0x2f   : > { %p2940_p3 = pnand %p2938_p10, %p2935_p6 }
  0x31   : > { %2943 = shalt.err (!%p2940_p3)
}
  0x32   : > { %s2944_s28 = scalar_lea.vmem %s3177_s6, 256  ;;  %p2952_p12 = scmp.lt.s32.totalorder %s3177_s6, %s3177_s6 }
  0x33   : > { %p2945_p5 = scmp.ne.s32.totalorder %s3177_s6, %s2944_s28  ;;  %p2953_p0 = scmp.lt.s32.totalorder %s2944_s28, %s2944_s28 }
  0x35   : > { %p2947_p7 = pnand %p2945_p5, %p2905_p13  ;;  %p2954_p1 = por %p2953_p0, %p2952_p12 }
  0x37   : > { %p2948_p9 = pneg %p2947_p7 }
  0x39   : > { %p2955_p2 = pnand %p2954_p1, %p2948_p9 }
  0x3b   : > { %2958 = shalt.err (!%p2955_p2)
}
  0x3c   : > { %2723 = dma.hbm_to_vmem [thread:$0]  (!%p3173_p11), %s3698_s3, 256, %s3177_s6, [#allocation6], %s3063_s15, %s3063_s15, %s3064_s16  }
  0x3d   : > { %s3238_s29 = sadd.s32 1, %s3059_s21   ;;  %s29_s14 = sadd.s32 1, %s3055_s20 }
  0x3e   : > { %s26_s17 = ssub.s32 %s3059_s21, %s3238_s29  ;;  %p36_p13 = scmp.ne.s32.totalorder %s3055_s20, %s3051_s19 }
  0x3f   : > { %p27_p6 = scmp.eq.s32.totalorder %s26_s17, 0  ;;  %p37_p10 = scmp.eq.s32.totalorder %s3059_s21, 0 }
  0x40   : > { %p3708_p3 = scmp.eq.s32.totalorder %s3143_s22, 1  ;;  %p2734_p7 = scmp.lt.s32.totalorder %s3059_s21, 2 }
  0x41   : > { %s3254_s27 = scalar_select %p27_p6, %s3055_s20, %s29_s14  }
  0x42   : > { %p3248_p5 = por %p3708_p3, %p36_p13  ;;  %p38_p9 = por %p37_p10, %p36_p13 }
  0x43   : > { %s208_s30 = sand.u32 1, %s3055_s20   ;;  %s2425_s6 = sshll.u32 %s3059_s21, 7 }
  0x44   : > { %s3709_s23 = scalar_select %p3248_p5, 1, 0 }
  0x45   : > { %s2371_s7 = sshll.u32 %s208_s30, 3  ;;  %s3261_s10 = scalar_lea.hbm %s3695_s0, %s2425_s6 }
  0x46   : > { %s212_s11 = scalar_lea.vmem [#allocation2], %s2371_s7  ;;  %p3265_p11 = pnand %p2734_p7, %p38_p9 }
  0x47   : > { %s219_s28 = sshll.u32 %s212_s11, 4  ;;  %s3269_s13 = scalar_lea.sflag [#allocation3], %s208_s30  ;;  %s3263_s28 = int_to_ptr.vmem [resolvable:$true] %s219_s28 }
  0x48   : > { %s2959_s14 = scalar_lea.hbm %s3261_s10, 128  ;;  %p2961_p0 = pneg %p3265_p11 }
  0x49   : > { %p2960_p12 = scmp.ne.s32.totalorder %s3261_s10, %s2959_s14  ;;  %s2964_s6 = scalar_lea.hbm %s3695_s0, 256 }
  0x4a   : > { %p2965_p13 = scmp.lt.u32.totalorder %s3261_s10, %s3695_s0  ;;  %p2966_p6 = scmp.lt.u32.totalorder %s2964_s6, %s2959_s14 }
  0x4b   : > { %p2962_p1 = pnand %p2961_p0, %p2960_p12  ;;  %p2968_p3 = scmp.lt.u32.totalorder %s2959_s14, %s3261_s10 }
  0x4c   : > { %p2967_p10 = por %p2966_p6, %p2965_p13 }
  0x4d   : > { %p2963_p2 = pneg %p2962_p1 }
  0x4e   : > { %p2969_p7 = por %p2968_p3, %p2967_p10 }
  0x50   : > { %p2970_p9 = pnand %p2969_p7, %p2963_p2 }
  0x52   : > { %2973 = shalt.err (!%p2970_p9)
}
  0x53   : > { %s2974_s30 = scalar_lea.vmem %s3263_s28, 128  ;;  %s3065_s11 = smov [#allocation2]  }
  0x54   : > { %p2975_p12 = scmp.ne.s32.totalorder %s3263_s28, %s2974_s30  ;;  %s2979_s17 = sshll.u32 %s3065_s11, 4  ;;  %s2980_s17 = int_to_ptr.vmem [resolvable:$false] %s2979_s17 }
  0x55   : > { %s2981_s7 = scalar_lea.vmem %s2980_s17, 256  ;;  %p2982_p4 = scmp.lt.s32.totalorder %s3263_s28, %s2980_s17 }
  0x56   : > { %p2977_p1 = pnand %p2975_p12, %p2961_p0  ;;  %p2983_p13 = scmp.lt.s32.totalorder %s2981_s7, %s2974_s30 }
  0x58   : > { %p2978_p5 = pneg %p2977_p1  ;;  %p2984_p6 = por %p2983_p13, %p2982_p4 }
  0x5a   : > { %p2985_p10 = pnand %p2984_p6, %p2978_p5 }
  0x5c   : > { %2988 = shalt.err (!%p2985_p10)
}
  0x5d   : > { %2727 = dma.hbm_to_vmem [thread:$0]  (!%p3265_p11), %s3261_s10, 128, %s3263_s28, %s3269_s13, %s3063_s15, %s3063_s15, %s3064_s16  }
  0x5e   : > { %231 = sbr.rel (%p3162_p8) target bundleno = 5200 (0x1450), region = 40  ;;  %s3303_s14 = sand.u32 (!%p3162_p8), 1, %s3051_s19  }
  0x5f   : > { %s2375_s6 = sshll.u32 (!%p3162_p8), %s3303_s14, 3  ;;  %s234_s8 = scalar_lea.sflag (!%p3162_p8), [#allocation3], %s3303_s14 }
  0x60   : > { %s237_s9 = scalar_lea.vmem (!%p3162_p8), [#allocation2], %s2375_s6  ;;  %p3711_p4 = scmp.ne.s32.totalorder (!%p3162_p8), %s3704_s24, 0 }
  0x65   : > { %3034 = dma.done.wait (%p3711_p4), %s234_s8, 128  }
  0x66   : > { %3036 = vsyncadd (%p3711_p4), %s234_s8, 4294967168  ;;  %p3712_p5 = scmp.eq.s32.totalorder %s3143_s22, 0 }
  0x68   : > { %3038 = dma.done.wait (%p3712_p5), [#allocation6], 512   ;;  %p3713_p11 = pmov %p3712_p5 }
  0x69   : > { %v3066_v0 = vmov 0.0   ;;  %vm3067_vm0 = vmmov 0   ;;  %v2834_v1 = vld [vmem:[#allocation5] sm:$0xff]   ;;  %v2835_v2 = vld [vmem:[#allocation5 + $0x8] sm:$0xff]   ;;  %v2836_v3 = vld [vmem:[%s237_s9] sm:$0xff]   ;;  %vm305_vm1 = vcmask 261120  }
  0x6a   : > { %3040 = vsyncadd (%p3713_p11), [#allocation6], 4294966784  ;;  %2497 = vmatprep.subr.bf16.mxu0 %v3066_v0  ;;  %2501 = vmatprep.mubr.msk.bf16.mxu0 %vm3067_vm0, %v3066_v0  ;;  %v2379_v4 = vld [vmem:[%s3697_s2] ss:$0 sm:$0xff]  ;;  %vm356_vm2 = vcmask 31744   ;;  %s3068_s15 = smov 96  }
  0x6b   : > { %2505 = vmatprep.subr.bf16.mxu1 %v3066_v0  ;;  %2507 = vmatprep.mubr.msk.bf16.mxu1 %vm3067_vm0, %v3066_v0  ;;  %s3069_s16 = smov 124   ;;  %vm480_vm3 = vcmask 1043456   ;;  %vm449_vm4 = vcmask 64512   ;;  %s3070_s10 = smov 92   ;;  %vm2175_vm5 = vcmask 97280   ;;  %vm2178_vm6 = vcmask 130048  }
  0x6c   : > { %2498 = vmatpush3.bf16.msra.mxu0 %v2834_v1  ;;  %s3071_s28 = smov 120   ;;  %s3072_s12 = smov 88   ;;  %vm2181_vm7 = vcmask 162816   ;;  %vm2184_vm8 = vcmask 195584   ;;  %vm2187_vm9 = vcmask 228352  }
  0x6d   : > { %2499 = vmatprep.subr.bf16.mxu0 %v3066_v0  ;;  %s3073_s13 = smov 116   ;;  %s3074_s30 = smov 84  }
  0x6e   : > { %s3075_s11 = smov 112   ;;  %s3076_s17 = smov 80  }
  0x6f   : > { %s3077_s7 = smov 108   ;;  %s3078_s6 = smov 76  }
  0x70   : > { %2500 = vmatpush3.bf16.msra.mxu0 %v2835_v2  ;;  %s3079_s8 = smov 104   ;;  %s3080_s9 = smov 72  }
  0x71   : > { %2511 = vmatprep.subr.bf16.mxu0 %v3066_v0  ;;  %s3081_s24 = smov 100   ;;  %s3082_s26 = smov 68  }
  0x72   : > { %p3714_p0 = scmp.ne.s32.totalorder %s3709_s23, 0 }
  0x73   : > { %2502 = vmatmul.mubr.msk.bf16.vlgmr.msra.gmra.mrb[0].mxu0 %vm305_vm1, %v2836_v3 }
  0x74   : > { %2513 = vmatprep.mubr.msk.bf16.mxu0 %vm3067_vm0, %v3066_v0 }
 0x146   : > { %v343_v5 = vpop.f32.mrb[0].mxu0 }
 0x147   : > { %v344_v6 = vadd.f32 %v2379_v4, %v343_v5  ;;  %v2503_v7 = vpop.f32.mrb[1].mxu0 }
 0x148   : > { %v346_v8 = vpop.f32.mrb[2].mxu0 }
 0x149   : > { %v3329_v9 = vpack.c.bf16 %v344_v6, %v344_v6  ;;  %v347_v10 = vadd.f32 %v2379_v4, %v346_v8  ;;  %v2504_v11 = vpop.f32.mrb[3].mxu0  ;;  %v350_v14 = vmul.f32 0.5, %v344_v6 }
 0x14b   : > { %v3331_v12 = vpack.c.bf16 %v347_v10, %v347_v10  ;;  %v361_v13 = vsel %vm356_vm2, %v3329_v9, 0  ;;  %v351_v16 = vmul.f32 0.5, %v347_v10  ;;  %v3341_v17 = vpack.c.bf16 %v350_v14, %v350_v14 }
 0x14c   : > { %2506 = vmatpush3.bf16.xpose.msra.mxu1 %v361_v13 }
 0x14d   : > { %525 = vrot.lane.b32.xlu1 %v3331_v12, %s3068_s15  ;;  %v407_v15 = vsel %vm356_vm2, %v3331_v12, 0  ;;  %2517 = vmatprep.subr.bf16.mxu1 %v3066_v0  ;;  %v3345_v18 = vpack.c.bf16 %v351_v16, %v351_v16 }
 0x14e   : > { %2512 = vmatpush3.bf16.xpose.msra.mxu0 %v407_v15 }
 0x14f   : > { %2523 = vmatprep.subr.bf16.mxu0 %v3066_v0 }
 0x151   : > { %576 = vrot.lane.b32.xlu1 %v3329_v9, %s3069_s16 }
 0x153   : > { %2508 = vmatmul.mubr.msk.bf16.vlgmr.msra.gmra.mrb[0].mxu1 %vm356_vm2, %v3341_v17 }
 0x154   : > { %2519 = vmatprep.mubr.msk.bf16.mxu1 %vm3067_vm0, %v3066_v0 }
 0x155   : > { %2514 = vmatmul.mubr.msk.bf16.vlgmr.msra.gmra.mrb[4].mxu0 %vm356_vm2, %v3345_v18 }
 0x156   : > { %2525 = vmatprep.mubr.msk.bf16.mxu0 %vm3067_vm0, %v3066_v0 }
 0x1bf   : > { %v526_v19 = vpop.permute.xlu1 %525 }
 0x1c0   : > { %v531_v20 = vsel %vm480_vm3, %v526_v19, 0 }
 0x1c1   : > { %2524 = vmatpush3.bf16.msra.mxu0 %v531_v20 }
 0x1c2   : > { %2535 = vmatprep.subr.bf16.mxu0 %v3066_v0 }
 0x1c3   : > { %v577_v43 = vpop.permute.xlu1 %576 }
 0x1c4   : > { %v582_v50 = vsel %vm356_vm2, %v577_v43, 0 }
 0x226   : > { %v397_v21 = vpop.f32.mrb[0].mxu1 }
 0x227   : > { %v2509_v22 = vpop.f32.mrb[1].mxu1  ;;  %v450_v23 = vsel %vm449_vm4, %v397_v21, -inf }
 0x228   : > { %451 = vmax.xlane.f32.xlu0 %v450_v23  ;;  %v400_v24 = vpop.f32.mrb[2].mxu1  ;;  %v443_v25 = vpop.f32.mrb[4].mxu0 }
 0x229   : > { %v2510_v26 = vpop.f32.mrb[3].mxu1  ;;  %v2515_v27 = vpop.f32.mrb[5].mxu0  ;;  %v453_v30 = vsel %vm449_vm4, %v443_v25, -inf }
 0x22a   : > { %v446_v28 = vpop.f32.mrb[6].mxu0 }
 0x22b   : > { %v2516_v29 = vpop.f32.mrb[7].mxu0 }
 0x22c   : > { %454 = vmax.xlane.f32.xlu0 %v453_v30 }
 0x242   : > { %475 = vrot.lane.b32.xlu0 %v3329_v9, %s3068_s15  ;;  %s3083_s15 = smov 4  }
 0x246   : > { %574 = vrot.lane.b32.xlu0 %v3341_v17, %s3069_s16 }
 0x2b5   : > { %v452_v31 = vpop.xlane.xlu0 %451 }
 0x2b6   : > { %v456_v32 = vsub.f32 %v397_v21, %v452_v31 }
 0x2b8   : > { %v458_v33 = vmul.f32 1.442695, %v456_v32 }
 0x2b9   : > { %v455_v34 = vpop.xlane.xlu0 %454 }
 0x2ba   : > { %2839 = vpow2.f32 %v458_v33  ;;  %v457_v35 = vsub.f32 %v443_v25, %v455_v34 }
 0x2bc   : > { %v460_v36 = vmul.f32 1.442695, %v457_v35 }
 0x2bd   : > { %v476_v37 = vpop.permute.xlu0 %475 }
 0x2be   : > { %2841 = vpow2.f32 %v460_v36  ;;  %v482_v38 = vsel %vm480_vm3, %v476_v37, 0 }
 0x2bf   : > { %2518 = vmatpush3.bf16.msra.mxu1 %v482_v38 }
 0x2c0   : > { %2529 = vmatprep.subr.bf16.mxu1 %v3066_v0 }
 0x2c1   : > { %v575_v55 = vpop.permute.xlu0 %574 }
 0x2c4   : > { %v2840_v39 = vpop.eup %2839 }
 0x2c5   : > { %v462_v40 = vsel %vm449_vm4, %v2840_v39, 0.0 }
 0x2c6   : > { %463 = vadd.xlane.f32.xlu1 %v462_v40 }
 0x2c8   : > { %v2842_v41 = vpop.eup %2841 }
 0x2c9   : > { %v465_v42 = vsel %vm449_vm4, %v2842_v41, 0.0 }
 0x2ca   : > { %466 = vadd.xlane.f32.xlu1 %v465_v42 }
 0x2db   : > { %627 = vrot.lane.b32.xlu1 %v3331_v12, %s3069_s16 }
 0x2df   : > { %625 = vrot.lane.b32.xlu1 %v3345_v18, %s3069_s16  ;;  %s3084_s16 = smov 8  }
 0x353   : > { %v464_v44 = vpop.xlane.xlu1 %463 }
 0x354   : > { %2843 = vrcp.f32 %v464_v44 }
 0x357   : > { %v467_v45 = vpop.xlane.xlu1 %466 }
 0x358   : > { %2845 = vrcp.f32 %v467_v45 }
 0x35b   : > { %v628_v52 = vpop.permute.xlu1 %627 }
 0x35c   : > { %v633_v54 = vsel %vm356_vm2, %v628_v52, 0 }
 0x35e   : > { %v2844_v46 = vpop.eup %2843 }
 0x35f   : > { %v470_v47 = vmul.f32 %v2844_v46, %v2840_v39  ;;  %v626_v56 = vpop.permute.xlu1 %625 }
 0x361   : > { %v472_v48 = vpack.c.bf16 %v470_v47, %v470_v47 }
 0x362   : > { %v2846_v49 = vpop.eup %2845 }
 0x363   : > { %v471_v51 = vmul.f32 %v2846_v49, %v2842_v41  ;;  %2520 = vmatmul.mubr.msk.bf16.vlgmr.msra.gmra.mrb[4].mxu1 %vm449_vm4, %v472_v48 }
 0x364   : > { %2530 = vmatpush3.bf16.xpose.msra.mxu1 %v582_v50  ;;  %2531 = vmatprep.mubr.msk.bf16.mxu1 %vm3067_vm0, %v3066_v0 }
 0x365   : > { %v473_v53 = vpack.c.bf16 %v471_v51, %v471_v51  ;;  %2541 = vmatprep.subr.bf16.mxu1 %v3066_v0 }
 0x367   : > { %2526 = vmatmul.mubr.msk.bf16.vlgmr.msra.gmra.mrb[8].mxu0 %vm449_vm4, %v473_v53 }
 0x368   : > { %2536 = vmatpush3.bf16.xpose.msra.mxu0 %v633_v54  ;;  %2537 = vmatprep.mubr.msk.bf16.mxu0 %vm3067_vm0, %v3066_v0 }
 0x369   : > { %2547 = vmatprep.subr.bf16.mxu0 %v3066_v0 }
 0x36b   : > { %2532 = vmatmul.mubr.msk.bf16.vlgmr.msra.gmra.mrb[8].mxu1 %vm356_vm2, %v575_v55 }
 0x36c   : > { %2543 = vmatprep.mubr.msk.bf16.mxu1 %vm3067_vm0, %v3066_v0 }
 0x36f   : > { %2538 = vmatmul.mubr.msk.bf16.vlgmr.msra.gmra.mrb[12].mxu0 %vm356_vm2, %v626_v56 }
 0x370   : > { %2549 = vmatprep.mubr.msk.bf16.mxu0 %vm3067_vm0, %v3066_v0 }
 0x436   : > { %v3387_v57 = vpop.f32.mrb[4].mxu1 }
 0x437   : > { %v2521_v58 = vpop.f32.mrb[5].mxu1 }
 0x438   : > { %v521_v59 = vpop.f32.mrb[6].mxu1 }
 0x439   : > { %v2522_v60 = vpop.f32.mrb[7].mxu1 }
 0x43a   : > { %v3389_v61 = vpop.f32.mrb[8].mxu0 }
 0x43b   : > { %v2527_v62 = vpop.f32.mrb[9].mxu0 }
 0x43c   : > { %v570_v63 = vpop.f32.mrb[10].mxu0 }
 0x43d   : > { %v2528_v1 = vpop.f32.mrb[11].mxu0 }
 0x43e   : > { %v618_v2 = vpop.f32.mrb[8].mxu1 }
 0x43f   : > { %v2533_v3 = vpop.f32.mrb[9].mxu1  ;;  %v675_v4 = vsel %vm449_vm4, %v618_v2, -inf }
 0x440   : > { %676 = vmax.xlane.f32.xlu0 %v675_v4  ;;  %v621_v5 = vpop.f32.mrb[10].mxu1 }
 0x441   : > { %v2534_v6 = vpop.f32.mrb[11].mxu1 }
 0x442   : > { %v669_v7 = vpop.f32.mrb[12].mxu0 }
 0x443   : > { %v2539_v8 = vpop.f32.mrb[13].mxu0  ;;  %v678_v10 = vsel %vm449_vm4, %v669_v7, -inf }
 0x444   : > { %679 = vmax.xlane.f32.xlu1 %v678_v10  ;;  %v672_v11 = vpop.f32.mrb[14].mxu0 }
 0x445   : > { %v2540_v13 = vpop.f32.mrb[15].mxu0 }
 0x455   : > { %747 = vrot.lane.b32.xlu1 %v3331_v12, %s3070_s10 }
 0x459   : > { %797 = vrot.lane.b32.xlu1 %v3329_v9, %s3071_s28 }
 0x45d   : > { %847 = vrot.lane.b32.xlu1 %v3331_v12, %s3071_s28 }
 0x461   : > { %845 = vrot.lane.b32.xlu1 %v3345_v18, %s3071_s28 }
 0x4cd   : > { %v677_v14 = vpop.xlane.xlu0 %676 }
 0x4ce   : > { %v681_v15 = vsub.f32 %v618_v2, %v677_v14 }
 0x4d0   : > { %v683_v16 = vmul.f32 1.442695, %v681_v15 }
 0x4d1   : > { %v680_v19 = vpop.xlane.xlu1 %679 }
 0x4d2   : > { %2847 = vpow2.f32 %v683_v16  ;;  %v682_v20 = vsub.f32 %v669_v7, %v680_v19 }
 0x4d4   : > { %v685_v21 = vmul.f32 1.442695, %v682_v20 }
 0x4d5   : > { %v748_v22 = vpop.permute.xlu1 %747 }
 0x4d6   : > { %2849 = vpow2.f32 %v685_v21  ;;  %v753_v23 = vsel %vm480_vm3, %v748_v22, 0 }
 0x4d7   : > { %2548 = vmatpush3.bf16.msra.mxu0 %v753_v23 }
 0x4d8   : > { %2559 = vmatprep.subr.bf16.mxu0 %v3066_v0 }
 0x4d9   : > { %v798_v33 = vpop.permute.xlu1 %797 }
 0x4da   : > { %v803_v39 = vsel %vm356_vm2, %v798_v33, 0 }
 0x4dc   : > { %v2848_v24 = vpop.eup %2847 }
 0x4dd   : > { %v687_v25 = vsel %vm449_vm4, %v2848_v24, 0.0  ;;  %v848_v38 = vpop.permute.xlu1 %847 }
 0x4de   : > { %688 = vadd.xlane.f32.xlu0 %v687_v25  ;;  %v853_v41 = vsel %vm356_vm2, %v848_v38, 0 }
 0x4e0   : > { %v2850_v26 = vpop.eup %2849 }
 0x4e1   : > { %v690_v27 = vsel %vm449_vm4, %v2850_v26, 0.0  ;;  %v846_v43 = vpop.permute.xlu1 %845 }
 0x4e2   : > { %691 = vadd.xlane.f32.xlu0 %v690_v27 }
 0x4f8   : > { %699 = vrot.lane.b32.xlu0 %v3329_v9, %s3070_s10  ;;  %s3085_s10 = smov 16  }
 0x4fc   : > { %795 = vrot.lane.b32.xlu0 %v3341_v17, %s3071_s28  ;;  %s3086_s28 = smov 24  }
 0x56b   : > { %v689_v28 = vpop.xlane.xlu0 %688 }
 0x56c   : > { %2851 = vrcp.f32 %v689_v28 }
 0x56f   : > { %v692_v29 = vpop.xlane.xlu0 %691 }
 0x570   : > { %2853 = vrcp.f32 %v692_v29 }
 0x573   : > { %v700_v30 = vpop.permute.xlu0 %699 }
 0x574   : > { %v705_v31 = vsel %vm480_vm3, %v700_v30, 0 }
 0x575   : > { %2542 = vmatpush3.bf16.msra.mxu1 %v705_v31 }
 0x576   : > { %v2852_v32 = vpop.eup %2851  ;;  %2553 = vmatprep.subr.bf16.mxu1 %v3066_v0 }
 0x577   : > { %v695_v34 = vmul.f32 %v2852_v32, %v2848_v24  ;;  %v796_v42 = vpop.permute.xlu0 %795 }
 0x579   : > { %v697_v35 = vpack.c.bf16 %v695_v34, %v695_v34 }
 0x57a   : > { %v2854_v36 = vpop.eup %2853 }
 0x57b   : > { %v696_v37 = vmul.f32 %v2854_v36, %v2850_v26  ;;  %2544 = vmatmul.mubr.msk.bf16.vlgmr.msra.gmra.mrb[12].mxu1 %vm449_vm4, %v697_v35 }
 0x57c   : > { %2555 = vmatprep.mubr.msk.bf16.mxu1 %vm3067_vm0, %v3066_v0 }
 0x57d   : > { %v698_v40 = vpack.c.bf16 %v696_v37, %v696_v37 }
 0x57e   : > { %2554 = vmatpush3.bf16.xpose.msra.mxu1 %v803_v39 }
 0x57f   : > { %2550 = vmatmul.mubr.msk.bf16.vlgmr.msra.gmra.mrb[16].mxu0 %vm449_vm4, %v698_v40  ;;  %2565 = vmatprep.subr.bf16.mxu1 %v3066_v0 }
 0x580   : > { %2560 = vmatpush3.bf16.xpose.msra.mxu0 %v853_v41  ;;  %2561 = vmatprep.mubr.msk.bf16.mxu0 %vm3067_vm0, %v3066_v0 }
 0x581   : > { %2571 = vmatprep.subr.bf16.mxu0 %v3066_v0 }
 0x585   : > { %2556 = vmatmul.mubr.msk.bf16.vlgmr.msra.gmra.mrb[16].mxu1 %vm356_vm2, %v796_v42 }
 0x586   : > { %2567 = vmatprep.mubr.msk.bf16.mxu1 %vm3067_vm0, %v3066_v0 }
 0x587   : > { %2562 = vmatmul.mubr.msk.bf16.vlgmr.msra.gmra.mrb[20].mxu0 %vm356_vm2, %v846_v43 }
 0x588   : > { %2573 = vmatprep.mubr.msk.bf16.mxu0 %vm3067_vm0, %v3066_v0 }
 0x64e   : > { %v3421_v44 = vpop.f32.mrb[12].mxu1 }
 0x64f   : > { %v2545_v45 = vpop.f32.mrb[13].mxu1 }
 0x650   : > { %v744_v46 = vpop.f32.mrb[14].mxu1 }
 0x651   : > { %v2546_v47 = vpop.f32.mrb[15].mxu1 }
 0x652   : > { %v3423_v48 = vpop.f32.mrb[16].mxu0 }
 0x653   : > { %v2799_v49 = vpack.i.bf16 %v3423_v48, %v3421_v44  ;;  %v2551_v50 = vpop.f32.mrb[17].mxu0 }
 0x654   : > { %v792_v51 = vpop.f32.mrb[18].mxu0 }
 0x655   : > { %v2552_v52 = vpop.f32.mrb[19].mxu0 }
 0x658   : > { %v839_v53 = vpop.f32.mrb[16].mxu1 }
 0x659   : > { %v2557_v54 = vpop.f32.mrb[17].mxu1  ;;  %v895_v55 = vsel %vm449_vm4, %v839_v53, -inf }
 0x65a   : > { %896 = vmax.xlane.f32.xlu0 %v895_v55  ;;  %v842_v56 = vpop.f32.mrb[18].mxu1  ;;  %v889_v58 = vpop.f32.mrb[20].mxu0 }
 0x65b   : > { %v2558_v59 = vpop.f32.mrb[19].mxu1  ;;  %v2563_v60 = vpop.f32.mrb[21].mxu0  ;;  %v898_v62 = vsel %vm449_vm4, %v889_v58, -inf }
 0x65c   : > { %899 = vmax.xlane.f32.xlu1 %v898_v62  ;;  %v892_v63 = vpop.f32.mrb[22].mxu0 }
 0x65d   : > { %v2564_v1 = vpop.f32.mrb[23].mxu0 }
 0x66d   : > { %967 = vrot.lane.b32.xlu1 %v3331_v12, %s3072_s12 }
 0x671   : > { %1017 = vrot.lane.b32.xlu1 %v3329_v9, %s3073_s13 }
 0x675   : > { %1067 = vrot.lane.b32.xlu1 %v3331_v12, %s3073_s13 }
 0x679   : > { %1065 = vrot.lane.b32.xlu1 %v3345_v18, %s3073_s13 }
 0x6e7   : > { %v897_v2 = vpop.xlane.xlu0 %896 }
 0x6e8   : > { %v901_v3 = vsub.f32 %v839_v53, %v897_v2 }
 0x6e9   : > { %v900_v4 = vpop.xlane.xlu1 %899 }
 0x6ea   : > { %v903_v5 = vmul.f32 1.442695, %v901_v3  ;;  %v902_v6 = vsub.f32 %v889_v58, %v900_v4 }
 0x6ec   : > { %2855 = vpow2.f32 %v903_v5  ;;  %v905_v7 = vmul.f32 1.442695, %v902_v6 }
 0x6ed   : > { %v968_v8 = vpop.permute.xlu1 %967 }
 0x6ee   : > { %2857 = vpow2.f32 %v905_v7  ;;  %v973_v10 = vsel %vm480_vm3, %v968_v8, 0 }
 0x6ef   : > { %2572 = vmatpush3.bf16.msra.mxu0 %v973_v10 }
 0x6f0   : > { %2583 = vmatprep.subr.bf16.mxu0 %v3066_v0 }
 0x6f1   : > { %v1018_v23 = vpop.permute.xlu1 %1017 }
 0x6f2   : > { %v1023_v29 = vsel %vm356_vm2, %v1018_v23, 0 }
 0x6f5   : > { %v1068_v28 = vpop.permute.xlu1 %1067 }
 0x6f6   : > { %v2856_v11 = vpop.eup %2855  ;;  %v1073_v31 = vsel %vm356_vm2, %v1068_v28, 0 }
 0x6f7   : > { %v907_v13 = vsel %vm449_vm4, %v2856_v11, 0.0 }
 0x6f8   : > { %v2858_v14 = vpop.eup %2857  ;;  %908 = vadd.xlane.f32.xlu0 %v907_v13 }
 0x6f9   : > { %v910_v15 = vsel %vm449_vm4, %v2858_v14, 0.0  ;;  %v1066_v33 = vpop.permute.xlu1 %1065 }
 0x6fc   : > { %911 = vadd.xlane.f32.xlu0 %v910_v15 }
 0x712   : > { %919 = vrot.lane.b32.xlu0 %v3329_v9, %s3072_s12  ;;  %s3087_s12 = smov 12  }
 0x716   : > { %1015 = vrot.lane.b32.xlu0 %v3341_v17, %s3073_s13  ;;  %s3088_s13 = smov 20  }
 0x785   : > { %v909_v16 = vpop.xlane.xlu0 %908 }
 0x786   : > { %2859 = vrcp.f32 %v909_v16 }
 0x789   : > { %v912_v19 = vpop.xlane.xlu0 %911 }
 0x78a   : > { %2861 = vrcp.f32 %v912_v19 }
 0x78d   : > { %v920_v20 = vpop.permute.xlu0 %919 }
 0x78e   : > { %v925_v21 = vsel %vm480_vm3, %v920_v20, 0 }
 0x78f   : > { %2566 = vmatpush3.bf16.msra.mxu1 %v925_v21 }
 0x790   : > { %v2860_v22 = vpop.eup %2859  ;;  %2577 = vmatprep.subr.bf16.mxu1 %v3066_v0 }
 0x791   : > { %v915_v24 = vmul.f32 %v2860_v22, %v2856_v11  ;;  %v1016_v32 = vpop.permute.xlu0 %1015 }
 0x793   : > { %v917_v25 = vpack.c.bf16 %v915_v24, %v915_v24 }
 0x794   : > { %v2862_v26 = vpop.eup %2861 }
 0x795   : > { %v916_v27 = vmul.f32 %v2862_v26, %v2858_v14  ;;  %2568 = vmatmul.mubr.msk.bf16.vlgmr.msra.gmra.mrb[20].mxu1 %vm449_vm4, %v917_v25 }
 0x796   : > { %2579 = vmatprep.mubr.msk.bf16.mxu1 %vm3067_vm0, %v3066_v0 }
 0x797   : > { %v918_v30 = vpack.c.bf16 %v916_v27, %v916_v27 }
 0x798   : > { %2578 = vmatpush3.bf16.xpose.msra.mxu1 %v1023_v29 }
 0x799   : > { %2574 = vmatmul.mubr.msk.bf16.vlgmr.msra.gmra.mrb[24].mxu0 %vm449_vm4, %v918_v30  ;;  %2589 = vmatprep.subr.bf16.mxu1 %v3066_v0 }
 0x79a   : > { %2584 = vmatpush3.bf16.xpose.msra.mxu0 %v1073_v31  ;;  %2585 = vmatprep.mubr.msk.bf16.mxu0 %vm3067_vm0, %v3066_v0 }
 0x79b   : > { %2595 = vmatprep.subr.bf16.mxu0 %v3066_v0 }
 0x79f   : > { %2580 = vmatmul.mubr.msk.bf16.vlgmr.msra.gmra.mrb[24].mxu1 %vm356_vm2, %v1016_v32 }
 0x7a0   : > { %2591 = vmatprep.mubr.msk.bf16.mxu1 %vm3067_vm0, %v3066_v0 }
 0x7a1   : > { %2586 = vmatmul.mubr.msk.bf16.vlgmr.msra.gmra.mrb[28].mxu0 %vm356_vm2, %v1066_v33 }
 0x7a2   : > { %2597 = vmatprep.mubr.msk.bf16.mxu0 %vm3067_vm0, %v3066_v0 }
 0x868   : > { %v3457_v34 = vpop.f32.mrb[20].mxu1 }
 0x869   : > { %v2569_v35 = vpop.f32.mrb[21].mxu1 }
 0x86a   : > { %v964_v36 = vpop.f32.mrb[22].mxu1 }
 0x86b   : > { %v2570_v37 = vpop.f32.mrb[23].mxu1 }
 0x86c   : > { %v3459_v38 = vpop.f32.mrb[24].mxu0 }
 0x86d   : > { %v2804_v39 = vpack.i.bf16 %v3459_v38, %v3457_v34  ;;  %v2575_v40 = vpop.f32.mrb[25].mxu0 }
 0x86e   : > { %v1012_v41 = vpop.f32.mrb[26].mxu0 }
 0x86f   : > { %v2576_v42 = vpop.f32.mrb[27].mxu0 }
 0x872   : > { %v1059_v43 = vpop.f32.mrb[24].mxu1 }
 0x873   : > { %v2581_v45 = vpop.f32.mrb[25].mxu1  ;;  %v1115_v46 = vsel %vm449_vm4, %v1059_v43, -inf }
 0x874   : > { %1116 = vmax.xlane.f32.xlu0 %v1115_v46  ;;  %v1062_v47 = vpop.f32.mrb[26].mxu1  ;;  %v1109_v50 = vpop.f32.mrb[28].mxu0 }
 0x875   : > { %v2582_v51 = vpop.f32.mrb[27].mxu1  ;;  %v2587_v52 = vpop.f32.mrb[29].mxu0  ;;  %v1118_v53 = vsel %vm449_vm4, %v1109_v50, -inf }
 0x876   : > { %1119 = vmax.xlane.f32.xlu1 %v1118_v53  ;;  %v1112_v54 = vpop.f32.mrb[30].mxu0 }
 0x877   : > { %v2588_v55 = vpop.f32.mrb[31].mxu0 }
 0x887   : > { %1187 = vrot.lane.b32.xlu1 %v3331_v12, %s3074_s30 }
 0x88b   : > { %1237 = vrot.lane.b32.xlu1 %v3329_v9, %s3075_s11 }
 0x88f   : > { %1287 = vrot.lane.b32.xlu1 %v3331_v12, %s3075_s11 }
 0x893   : > { %1285 = vrot.lane.b32.xlu1 %v3345_v18, %s3075_s11 }
 0x901   : > { %v1117_v56 = vpop.xlane.xlu0 %1116 }
 0x902   : > { %v1121_v58 = vsub.f32 %v1059_v43, %v1117_v56 }
 0x903   : > { %v1120_v59 = vpop.xlane.xlu1 %1119 }
 0x904   : > { %v1123_v60 = vmul.f32 1.442695, %v1121_v58  ;;  %v1122_v62 = vsub.f32 %v1109_v50, %v1120_v59 }
 0x906   : > { %2863 = vpow2.f32 %v1123_v60  ;;  %v1125_v63 = vmul.f32 1.442695, %v1122_v62 }
 0x907   : > { %v1188_v1 = vpop.permute.xlu1 %1187 }
 0x908   : > { %2865 = vpow2.f32 %v1125_v63  ;;  %v1193_v2 = vsel %vm480_vm3, %v1188_v1, 0 }
 0x909   : > { %2596 = vmatpush3.bf16.msra.mxu0 %v1193_v2 }
 0x90a   : > { %2607 = vmatprep.subr.bf16.mxu0 %v3066_v0 }
 0x90b   : > { %v1238_v14 = vpop.permute.xlu1 %1237 }
 0x90c   : > { %v1243_v22 = vsel %vm356_vm2, %v1238_v14, 0 }
 0x90f   : > { %v1288_v21 = vpop.permute.xlu1 %1287 }
 0x910   : > { %v2864_v3 = vpop.eup %2863  ;;  %v1293_v24 = vsel %vm356_vm2, %v1288_v21, 0 }
 0x911   : > { %v1127_v4 = vsel %vm449_vm4, %v2864_v3, 0.0 }
 0x912   : > { %v2866_v5 = vpop.eup %2865  ;;  %1128 = vadd.xlane.f32.xlu0 %v1127_v4 }
 0x913   : > { %v1130_v6 = vsel %vm449_vm4, %v2866_v5, 0.0  ;;  %v1286_v26 = vpop.permute.xlu1 %1285 }
 0x916   : > { %1131 = vadd.xlane.f32.xlu0 %v1130_v6 }
 0x92c   : > { %1139 = vrot.lane.b32.xlu0 %v3329_v9, %s3074_s30  ;;  %s3089_s30 = smov 28  }
 0x930   : > { %1235 = vrot.lane.b32.xlu0 %v3341_v17, %s3075_s11  ;;  %s2378_s11 = sshll.u32 %s3303_s14, 4 }
 0x99f   : > { %v1129_v7 = vpop.xlane.xlu0 %1128 }
 0x9a0   : > { %2867 = vrcp.f32 %v1129_v7 }
 0x9a3   : > { %v1132_v8 = vpop.xlane.xlu0 %1131 }
 0x9a4   : > { %2869 = vrcp.f32 %v1132_v8 }
 0x9a7   : > { %v1140_v10 = vpop.permute.xlu0 %1139 }
 0x9a8   : > { %v1145_v11 = vsel %vm480_vm3, %v1140_v10, 0 }
 0x9a9   : > { %2590 = vmatpush3.bf16.msra.mxu1 %v1145_v11 }
 0x9aa   : > { %v2868_v13 = vpop.eup %2867  ;;  %2601 = vmatprep.subr.bf16.mxu1 %v3066_v0 }
 0x9ab   : > { %v1135_v15 = vmul.f32 %v2868_v13, %v2864_v3  ;;  %v1236_v25 = vpop.permute.xlu0 %1235 }
 0x9ad   : > { %v1137_v16 = vpack.c.bf16 %v1135_v15, %v1135_v15 }
 0x9ae   : > { %v2870_v19 = vpop.eup %2869 }
 0x9af   : > { %v1136_v20 = vmul.f32 %v2870_v19, %v2866_v5  ;;  %2592 = vmatmul.mubr.msk.bf16.vlgmr.msra.gmra.mrb[28].mxu1 %vm449_vm4, %v1137_v16 }
 0x9b0   : > { %2603 = vmatprep.mubr.msk.bf16.mxu1 %vm3067_vm0, %v3066_v0 }
 0x9b1   : > { %v1138_v23 = vpack.c.bf16 %v1136_v20, %v1136_v20 }
 0x9b2   : > { %2602 = vmatpush3.bf16.xpose.msra.mxu1 %v1243_v22 }
 0x9b3   : > { %2598 = vmatmul.mubr.msk.bf16.vlgmr.msra.gmra.mrb[32].mxu0 %vm449_vm4, %v1138_v23  ;;  %2613 = vmatprep.subr.bf16.mxu1 %v3066_v0 }
 0x9b4   : > { %2608 = vmatpush3.bf16.xpose.msra.mxu0 %v1293_v24  ;;  %2609 = vmatprep.mubr.msk.bf16.mxu0 %vm3067_vm0, %v3066_v0 }
 0x9b5   : > { %2619 = vmatprep.subr.bf16.mxu0 %v3066_v0 }
 0x9b9   : > { %2604 = vmatmul.mubr.msk.bf16.vlgmr.msra.gmra.mrb[32].mxu1 %vm356_vm2, %v1236_v25 }
 0x9ba   : > { %2615 = vmatprep.mubr.msk.bf16.mxu1 %vm3067_vm0, %v3066_v0 }
 0x9bb   : > { %2610 = vmatmul.mubr.msk.bf16.vlgmr.msra.gmra.mrb[36].mxu0 %vm356_vm2, %v1286_v26 }
 0x9bc   : > { %2621 = vmatprep.mubr.msk.bf16.mxu0 %vm3067_vm0, %v3066_v0 }
 0xa82   : > { %v3493_v27 = vpop.f32.mrb[28].mxu1 }
 0xa83   : > { %v2593_v28 = vpop.f32.mrb[29].mxu1 }
 0xa84   : > { %v1184_v29 = vpop.f32.mrb[30].mxu1 }
 0xa85   : > { %v2594_v30 = vpop.f32.mrb[31].mxu1 }
 0xa86   : > { %v3495_v31 = vpop.f32.mrb[32].mxu0 }
 0xa87   : > { %v2809_v32 = vpack.i.bf16 %v3495_v31, %v3493_v27  ;;  %v2599_v33 = vpop.f32.mrb[33].mxu0 }
 0xa88   : > { %v1232_v35 = vpop.f32.mrb[34].mxu0 }
 0xa89   : > { %v2600_v36 = vpop.f32.mrb[35].mxu0 }
 0xa8c   : > { %v1279_v37 = vpop.f32.mrb[32].mxu1 }
 0xa8d   : > { %v2605_v40 = vpop.f32.mrb[33].mxu1  ;;  %v1335_v41 = vsel %vm449_vm4, %v1279_v37, -inf }
 0xa8e   : > { %1336 = vmax.xlane.f32.xlu0 %v1335_v41  ;;  %v1282_v42 = vpop.f32.mrb[34].mxu1  ;;  %v1329_v43 = vpop.f32.mrb[36].mxu0 }
 0xa8f   : > { %v2606_v45 = vpop.f32.mrb[35].mxu1  ;;  %v2611_v46 = vpop.f32.mrb[37].mxu0  ;;  %v1338_v47 = vsel %vm449_vm4, %v1329_v43, -inf }
 0xa90   : > { %1339 = vmax.xlane.f32.xlu1 %v1338_v47  ;;  %v1332_v50 = vpop.f32.mrb[38].mxu0 }
 0xa91   : > { %v2612_v51 = vpop.f32.mrb[39].mxu0 }
 0xaa1   : > { %1407 = vrot.lane.b32.xlu1 %v3331_v12, %s3076_s17 }
 0xaa5   : > { %1457 = vrot.lane.b32.xlu1 %v3329_v9, %s3077_s7 }
 0xaa9   : > { %1507 = vrot.lane.b32.xlu1 %v3331_v12, %s3077_s7 }
 0xaad   : > { %1505 = vrot.lane.b32.xlu1 %v3345_v18, %s3077_s7 }
 0xb1b   : > { %v1337_v52 = vpop.xlane.xlu0 %1336 }
 0xb1c   : > { %v1341_v53 = vsub.f32 %v1279_v37, %v1337_v52 }
 0xb1d   : > { %v1340_v54 = vpop.xlane.xlu1 %1339 }
 0xb1e   : > { %v1343_v55 = vmul.f32 1.442695, %v1341_v53  ;;  %v1342_v56 = vsub.f32 %v1329_v43, %v1340_v54 }
 0xb20   : > { %2871 = vpow2.f32 %v1343_v55  ;;  %v1345_v58 = vmul.f32 1.442695, %v1342_v56 }
 0xb21   : > { %v1408_v59 = vpop.permute.xlu1 %1407 }
 0xb22   : > { %2873 = vpow2.f32 %v1345_v58  ;;  %v1413_v60 = vsel %vm480_vm3, %v1408_v59, 0 }
 0xb23   : > { %2620 = vmatpush3.bf16.msra.mxu0 %v1413_v60 }
 0xb24   : > { %2631 = vmatprep.subr.bf16.mxu0 %v3066_v0 }
 0xb25   : > { %v1458_v8 = vpop.permute.xlu1 %1457 }
 0xb26   : > { %v1463_v16 = vsel %vm356_vm2, %v1458_v8, 0 }
 0xb29   : > { %v1508_v15 = vpop.permute.xlu1 %1507 }
 0xb2a   : > { %v2872_v62 = vpop.eup %2871  ;;  %v1513_v20 = vsel %vm356_vm2, %v1508_v15, 0 }
 0xb2b   : > { %v1347_v63 = vsel %vm449_vm4, %v2872_v62, 0.0 }
 0xb2c   : > { %v2874_v1 = vpop.eup %2873  ;;  %1348 = vadd.xlane.f32.xlu0 %v1347_v63 }
 0xb2d   : > { %v1350_v2 = vsel %vm449_vm4, %v2874_v1, 0.0  ;;  %v1506_v22 = vpop.permute.xlu1 %1505 }
 0xb30   : > { %1351 = vadd.xlane.f32.xlu0 %v1350_v2 }
 0xb46   : > { %1359 = vrot.lane.b32.xlu0 %v3329_v9, %s3076_s17 }
 0xb4a   : > { %1455 = vrot.lane.b32.xlu0 %v3341_v17, %s3077_s7 }
 0xbb9   : > { %v1349_v3 = vpop.xlane.xlu0 %1348 }
 0xbba   : > { %2875 = vrcp.f32 %v1349_v3 }
 0xbbd   : > { %v1352_v4 = vpop.xlane.xlu0 %1351 }
 0xbbe   : > { %2877 = vrcp.f32 %v1352_v4 }
 0xbc1   : > { %v1360_v5 = vpop.permute.xlu0 %1359 }
 0xbc2   : > { %v1365_v6 = vsel %vm480_vm3, %v1360_v5, 0 }
 0xbc3   : > { %2614 = vmatpush3.bf16.msra.mxu1 %v1365_v6 }
 0xbc4   : > { %v2876_v7 = vpop.eup %2875  ;;  %2625 = vmatprep.subr.bf16.mxu1 %v3066_v0 }
 0xbc5   : > { %v1355_v10 = vmul.f32 %v2876_v7, %v2872_v62  ;;  %v1456_v21 = vpop.permute.xlu0 %1455 }
 0xbc7   : > { %v1357_v11 = vpack.c.bf16 %v1355_v10, %v1355_v10 }
 0xbc8   : > { %v2878_v13 = vpop.eup %2877 }
 0xbc9   : > { %v1356_v14 = vmul.f32 %v2878_v13, %v2874_v1  ;;  %2616 = vmatmul.mubr.msk.bf16.vlgmr.msra.gmra.mrb[36].mxu1 %vm449_vm4, %v1357_v11 }
 0xbca   : > { %2627 = vmatprep.mubr.msk.bf16.mxu1 %vm3067_vm0, %v3066_v0 }
 0xbcb   : > { %v1358_v19 = vpack.c.bf16 %v1356_v14, %v1356_v14 }
 0xbcc   : > { %2626 = vmatpush3.bf16.xpose.msra.mxu1 %v1463_v16 }
 0xbcd   : > { %2622 = vmatmul.mubr.msk.bf16.vlgmr.msra.gmra.mrb[40].mxu0 %vm449_vm4, %v1358_v19  ;;  %2637 = vmatprep.subr.bf16.mxu1 %v3066_v0 }
 0xbce   : > { %2632 = vmatpush3.bf16.xpose.msra.mxu0 %v1513_v20  ;;  %2633 = vmatprep.mubr.msk.bf16.mxu0 %vm3067_vm0, %v3066_v0 }
 0xbcf   : > { %2643 = vmatprep.subr.bf16.mxu0 %v3066_v0 }
 0xbd3   : > { %2628 = vmatmul.mubr.msk.bf16.vlgmr.msra.gmra.mrb[40].mxu1 %vm356_vm2, %v1456_v21 }
 0xbd4   : > { %2639 = vmatprep.mubr.msk.bf16.mxu1 %vm3067_vm0, %v3066_v0 }
 0xbd5   : > { %2634 = vmatmul.mubr.msk.bf16.vlgmr.msra.gmra.mrb[44].mxu0 %vm356_vm2, %v1506_v22 }
 0xbd6   : > { %2645 = vmatprep.mubr.msk.bf16.mxu0 %vm3067_vm0, %v3066_v0 }
 0xc9c   : > { %v3529_v23 = vpop.f32.mrb[36].mxu1 }
 0xc9d   : > { %v2617_v24 = vpop.f32.mrb[37].mxu1 }
 0xc9e   : > { %v1404_v25 = vpop.f32.mrb[38].mxu1 }
 0xc9f   : > { %v2618_v26 = vpop.f32.mrb[39].mxu1 }
 0xca0   : > { %v3531_v28 = vpop.f32.mrb[40].mxu0 }
 0xca1   : > { %v2814_v29 = vpack.i.bf16 %v3531_v28, %v3529_v23  ;;  %v2623_v30 = vpop.f32.mrb[41].mxu0 }
 0xca2   : > { %v1452_v33 = vpop.f32.mrb[42].mxu0 }
 0xca3   : > { %v2624_v35 = vpop.f32.mrb[43].mxu0 }
 0xca6   : > { %v1499_v36 = vpop.f32.mrb[40].mxu1 }
 0xca7   : > { %v2629_v37 = vpop.f32.mrb[41].mxu1  ;;  %v1555_v40 = vsel %vm449_vm4, %v1499_v36, -inf }
 0xca8   : > { %1556 = vmax.xlane.f32.xlu0 %v1555_v40  ;;  %v1502_v41 = vpop.f32.mrb[42].mxu1  ;;  %v1549_v42 = vpop.f32.mrb[44].mxu0 }
 0xca9   : > { %v2630_v43 = vpop.f32.mrb[43].mxu1  ;;  %v2635_v45 = vpop.f32.mrb[45].mxu0  ;;  %v1558_v46 = vsel %vm449_vm4, %v1549_v42, -inf }
 0xcaa   : > { %1559 = vmax.xlane.f32.xlu1 %v1558_v46  ;;  %v1552_v47 = vpop.f32.mrb[46].mxu0 }
 0xcab   : > { %v2636_v50 = vpop.f32.mrb[47].mxu0 }
 0xcbb   : > { %1627 = vrot.lane.b32.xlu1 %v3331_v12, %s3078_s6 }
 0xcbf   : > { %1677 = vrot.lane.b32.xlu1 %v3329_v9, %s3079_s8 }
 0xcc3   : > { %1727 = vrot.lane.b32.xlu1 %v3331_v12, %s3079_s8 }
 0xcc7   : > { %1725 = vrot.lane.b32.xlu1 %v3345_v18, %s3079_s8 }
 0xd35   : > { %v1557_v51 = vpop.xlane.xlu0 %1556 }
 0xd36   : > { %v1561_v52 = vsub.f32 %v1499_v36, %v1557_v51 }
 0xd37   : > { %v1560_v53 = vpop.xlane.xlu1 %1559 }
 0xd38   : > { %v1563_v54 = vmul.f32 1.442695, %v1561_v52  ;;  %v1562_v55 = vsub.f32 %v1549_v42, %v1560_v53 }
 0xd3a   : > { %2879 = vpow2.f32 %v1563_v54  ;;  %v1565_v56 = vmul.f32 1.442695, %v1562_v55 }
 0xd3b   : > { %v1628_v58 = vpop.permute.xlu1 %1627 }
 0xd3c   : > { %2881 = vpow2.f32 %v1565_v56  ;;  %v1633_v59 = vsel %vm480_vm3, %v1628_v58, 0 }
 0xd3d   : > { %2644 = vmatpush3.bf16.msra.mxu0 %v1633_v59 }
 0xd3e   : > { %2655 = vmatprep.subr.bf16.mxu0 %v3066_v0 }
 0xd3f   : > { %v1678_v7 = vpop.permute.xlu1 %1677 }
 0xd40   : > { %v1683_v15 = vsel %vm356_vm2, %v1678_v7, 0 }
 0xd43   : > { %v1728_v14 = vpop.permute.xlu1 %1727 }
 0xd44   : > { %v2880_v60 = vpop.eup %2879  ;;  %v1733_v19 = vsel %vm356_vm2, %v1728_v14, 0 }
 0xd45   : > { %v1567_v62 = vsel %vm449_vm4, %v2880_v60, 0.0 }
 0xd46   : > { %v2882_v63 = vpop.eup %2881  ;;  %1568 = vadd.xlane.f32.xlu0 %v1567_v62 }
 0xd47   : > { %v1570_v1 = vsel %vm449_vm4, %v2882_v63, 0.0  ;;  %v1726_v21 = vpop.permute.xlu1 %1725 }
 0xd4a   : > { %1571 = vadd.xlane.f32.xlu0 %v1570_v1 }
 0xd60   : > { %1579 = vrot.lane.b32.xlu0 %v3329_v9, %s3078_s6  ;;  %s271_s6 = scalar_lea.vmem [#allocation8], %s2378_s11 }
 0xd64   : > { %1675 = vrot.lane.b32.xlu0 %v3341_v17, %s3079_s8  ;;  %s2274_s8 = sshll.u32 %s271_s6, 4  ;;  %s3643_s8 = int_to_ptr.vmem [resolvable:$true] %s2274_s8 }
 0xdd3   : > { %v1569_v2 = vpop.xlane.xlu0 %1568 }
 0xdd4   : > { %2883 = vrcp.f32 %v1569_v2 }
 0xdd7   : > { %v1572_v3 = vpop.xlane.xlu0 %1571 }
 0xdd8   : > { %2885 = vrcp.f32 %v1572_v3 }
 0xddb   : > { %v1580_v4 = vpop.permute.xlu0 %1579 }
 0xddc   : > { %v1585_v5 = vsel %vm480_vm3, %v1580_v4, 0 }
 0xddd   : > { %2638 = vmatpush3.bf16.msra.mxu1 %v1585_v5 }
 0xdde   : > { %v2884_v6 = vpop.eup %2883  ;;  %2649 = vmatprep.subr.bf16.mxu1 %v3066_v0 }
 0xddf   : > { %v1575_v8 = vmul.f32 %v2884_v6, %v2880_v60  ;;  %v1676_v20 = vpop.permute.xlu0 %1675 }
 0xde1   : > { %v1577_v10 = vpack.c.bf16 %v1575_v8, %v1575_v8 }
 0xde2   : > { %v2886_v11 = vpop.eup %2885 }
 0xde3   : > { %v1576_v13 = vmul.f32 %v2886_v11, %v2882_v63  ;;  %2640 = vmatmul.mubr.msk.bf16.vlgmr.msra.gmra.mrb[44].mxu1 %vm449_vm4, %v1577_v10 }
 0xde4   : > { %2651 = vmatprep.mubr.msk.bf16.mxu1 %vm3067_vm0, %v3066_v0 }
 0xde5   : > { %v1578_v16 = vpack.c.bf16 %v1576_v13, %v1576_v13 }
 0xde6   : > { %2650 = vmatpush3.bf16.xpose.msra.mxu1 %v1683_v15 }
 0xde7   : > { %2646 = vmatmul.mubr.msk.bf16.vlgmr.msra.gmra.mrb[48].mxu0 %vm449_vm4, %v1578_v16  ;;  %2661 = vmatprep.subr.bf16.mxu1 %v3066_v0 }
 0xde8   : > { %2656 = vmatpush3.bf16.xpose.msra.mxu0 %v1733_v19  ;;  %2657 = vmatprep.mubr.msk.bf16.mxu0 %vm3067_vm0, %v3066_v0 }
 0xde9   : > { %2667 = vmatprep.subr.bf16.mxu0 %v3066_v0 }
 0xded   : > { %2652 = vmatmul.mubr.msk.bf16.vlgmr.msra.gmra.mrb[48].mxu1 %vm356_vm2, %v1676_v20 }
 0xdee   : > { %2663 = vmatprep.mubr.msk.bf16.mxu1 %vm3067_vm0, %v3066_v0 }
 0xdef   : > { %2658 = vmatmul.mubr.msk.bf16.vlgmr.msra.gmra.mrb[52].mxu0 %vm356_vm2, %v1726_v21 }
 0xdf0   : > { %2669 = vmatprep.mubr.msk.bf16.mxu0 %vm3067_vm0, %v3066_v0 }
 0xeb6   : > { %v3565_v22 = vpop.f32.mrb[44].mxu1 }
 0xeb7   : > { %v2641_v24 = vpop.f32.mrb[45].mxu1 }
 0xeb8   : > { %v1624_v25 = vpop.f32.mrb[46].mxu1 }
 0xeb9   : > { %v2642_v26 = vpop.f32.mrb[47].mxu1 }
 0xeba   : > { %v3567_v30 = vpop.f32.mrb[48].mxu0 }
 0xebb   : > { %v2819_v33 = vpack.i.bf16 %v3567_v30, %v3565_v22  ;;  %v2647_v35 = vpop.f32.mrb[49].mxu0  ;;  %v2837_v22 = vld [vmem:[#allocation7] sm:$0xff]   ;;  %v2838_v30 = vld [vmem:[#allocation7 + $0x8] sm:$0xff]  }
 0xebc   : > { %v1672_v36 = vpop.f32.mrb[50].mxu0 }
 0xebd   : > { %v2648_v37 = vpop.f32.mrb[51].mxu0 }
 0xec0   : > { %v1719_v40 = vpop.f32.mrb[48].mxu1 }
 0xec1   : > { %v2653_v41 = vpop.f32.mrb[49].mxu1  ;;  %v1775_v42 = vsel %vm449_vm4, %v1719_v40, -inf }
 0xec2   : > { %1776 = vmax.xlane.f32.xlu0 %v1775_v42  ;;  %v1722_v43 = vpop.f32.mrb[50].mxu1  ;;  %v1769_v45 = vpop.f32.mrb[52].mxu0 }
 0xec3   : > { %v2654_v46 = vpop.f32.mrb[51].mxu1  ;;  %v2659_v47 = vpop.f32.mrb[53].mxu0  ;;  %v1778_v50 = vsel %vm449_vm4, %v1769_v45, -inf }
 0xec4   : > { %1779 = vmax.xlane.f32.xlu1 %v1778_v50  ;;  %v1772_v51 = vpop.f32.mrb[54].mxu0 }
 0xec5   : > { %v2660_v52 = vpop.f32.mrb[55].mxu0 }
 0xed5   : > { %1847 = vrot.lane.b32.xlu1 %v3331_v12, %s3080_s9 }
 0xed9   : > { %1897 = vrot.lane.b32.xlu1 %v3329_v9, %s3081_s24 }
 0xedd   : > { %1947 = vrot.lane.b32.xlu1 %v3331_v12, %s3081_s24 }
 0xee1   : > { %1945 = vrot.lane.b32.xlu1 %v3345_v18, %s3081_s24 }
 0xf4f   : > { %v1777_v53 = vpop.xlane.xlu0 %1776 }
 0xf50   : > { %v1781_v54 = vsub.f32 %v1719_v40, %v1777_v53 }
 0xf51   : > { %v1780_v55 = vpop.xlane.xlu1 %1779 }
 0xf52   : > { %v1783_v56 = vmul.f32 1.442695, %v1781_v54  ;;  %v1782_v58 = vsub.f32 %v1769_v45, %v1780_v55 }
 0xf54   : > { %2887 = vpow2.f32 %v1783_v56  ;;  %v1785_v59 = vmul.f32 1.442695, %v1782_v58 }
 0xf55   : > { %v1848_v60 = vpop.permute.xlu1 %1847 }
 0xf56   : > { %2889 = vpow2.f32 %v1785_v59  ;;  %v1853_v62 = vsel %vm480_vm3, %v1848_v60, 0 }
 0xf57   : > { %2668 = vmatpush3.bf16.msra.mxu0 %v1853_v62 }
 0xf58   : > { %2679 = vmatprep.subr.bf16.mxu0 %v3066_v0 }
 0xf59   : > { %v1898_v8 = vpop.permute.xlu1 %1897 }
 0xf5d   : > { %v1948_v15 = vpop.permute.xlu1 %1947 }
 0xf5e   : > { %v2888_v63 = vpop.eup %2887  ;;  %v1953_v19 = vsel %vm356_vm2, %v1948_v15, 0 }
 0xf5f   : > { %v1787_v1 = vsel %vm449_vm4, %v2888_v63, 0.0 }
 0xf60   : > { %v2890_v2 = vpop.eup %2889  ;;  %1788 = vadd.xlane.f32.xlu0 %v1787_v1 }
 0xf61   : > { %v1790_v18 = vsel %vm449_vm4, %v2890_v2, 0.0  ;;  %v1946_v21 = vpop.permute.xlu1 %1945 }
 0xf64   : > { %1791 = vadd.xlane.f32.xlu0 %v1790_v18 }
 0xf7a   : > { %1799 = vrot.lane.b32.xlu0 %v3329_v9, %s3080_s9  ;;  %s2426_s9 = sshll.u32 %s3143_s22, 8  ;;  %s2261_s22 = scalar_lea.sflag [#allocation4], %s3303_s14 }
 0xf7e   : > { %1895 = vrot.lane.b32.xlu0 %v3341_v17, %s3081_s24  ;;  %v1903_v17 = vsel %vm356_vm2, %v1898_v8, 0 }
 0xfed   : > { %v1789_v3 = vpop.xlane.xlu0 %1788 }
 0xfee   : > { %2891 = vrcp.f32 %v1789_v3 }
 0xff1   : > { %v1792_v4 = vpop.xlane.xlu0 %1791 }
 0xff2   : > { %2893 = vrcp.f32 %v1792_v4 }
 0xff5   : > { %v1800_v5 = vpop.permute.xlu0 %1799 }
 0xff6   : > { %v1805_v6 = vsel %vm480_vm3, %v1800_v5, 0 }
 0xff7   : > { %2662 = vmatpush3.bf16.msra.mxu1 %v1805_v6 }
 0xff8   : > { %v2892_v7 = vpop.eup %2891  ;;  %2673 = vmatprep.subr.bf16.mxu1 %v3066_v0 }
 0xff9   : > { %v1795_v10 = vmul.f32 %v2892_v7, %v2888_v63  ;;  %v1896_v20 = vpop.permute.xlu0 %1895 }
 0xffb   : > { %v1797_v11 = vpack.c.bf16 %v1795_v10, %v1795_v10 }
 0xffc   : > { %v2894_v13 = vpop.eup %2893 }
 0xffd   : > { %v1796_v14 = vmul.f32 %v2894_v13, %v2890_v2  ;;  %2664 = vmatmul.mubr.msk.bf16.vlgmr.msra.gmra.mrb[52].mxu1 %vm449_vm4, %v1797_v11 }
 0xffe   : > { %2675 = vmatprep.mubr.msk.bf16.mxu1 %vm3067_vm0, %v3066_v0 }
 0xfff   : > { %v1798_v16 = vpack.c.bf16 %v1796_v14, %v1796_v14 }
0x1000   : > { %2674 = vmatpush3.bf16.xpose.msra.mxu1 %v1903_v17 }
0x1001   : > { %2670 = vmatmul.mubr.msk.bf16.vlgmr.msra.gmra.mrb[56].mxu0 %vm449_vm4, %v1798_v16  ;;  %2685 = vmatprep.subr.bf16.mxu1 %v3066_v0 }
0x1002   : > { %2680 = vmatpush3.bf16.xpose.msra.mxu0 %v1953_v19  ;;  %2681 = vmatprep.mubr.msk.bf16.mxu0 %vm3067_vm0, %v3066_v0 }
0x1003   : > { %2691 = vmatprep.subr.bf16.mxu0 %v3066_v0 }
0x1007   : > { %2676 = vmatmul.mubr.msk.bf16.vlgmr.msra.gmra.mrb[56].mxu1 %vm356_vm2, %v1896_v20 }
0x1008   : > { %2687 = vmatprep.mubr.msk.bf16.mxu1 %vm3067_vm0, %v3066_v0 }
0x1009   : > { %2682 = vmatmul.mubr.msk.bf16.vlgmr.msra.gmra.mrb[60].mxu0 %vm356_vm2, %v1946_v21 }
0x100a   : > { %2693 = vmatprep.mubr.msk.bf16.mxu0 %vm3067_vm0, %v3066_v0 }
0x10d0   : > { %v1841_v24 = vpop.f32.mrb[52].mxu1 }
0x10d1   : > { %v2665_v25 = vpop.f32.mrb[53].mxu1 }
0x10d2   : > { %v1844_v26 = vpop.f32.mrb[54].mxu1 }
0x10d3   : > { %v2666_v35 = vpop.f32.mrb[55].mxu1 }
0x10d4   : > { %v1889_v36 = vpop.f32.mrb[56].mxu0 }
0x10d5   : > { %v2824_v37 = vpack.i.bf16 %v1889_v36, %v1841_v24  ;;  %v2671_v40 = vpop.f32.mrb[57].mxu0 }
0x10d6   : > { %v1892_v41 = vpop.f32.mrb[58].mxu0 }
0x10d7   : > { %v2672_v42 = vpop.f32.mrb[59].mxu0 }
0x10da   : > { %v1939_v43 = vpop.f32.mrb[56].mxu1 }
0x10db   : > { %v2677_v45 = vpop.f32.mrb[57].mxu1  ;;  %v1995_v46 = vsel %vm449_vm4, %v1939_v43, -inf }
0x10dc   : > { %1996 = vmax.xlane.f32.xlu0 %v1995_v46  ;;  %v1942_v47 = vpop.f32.mrb[58].mxu1  ;;  %v1989_v50 = vpop.f32.mrb[60].mxu0 }
0x10dd   : > { %v2678_v51 = vpop.f32.mrb[59].mxu1  ;;  %v2683_v52 = vpop.f32.mrb[61].mxu0  ;;  %v1998_v53 = vsel %vm449_vm4, %v1989_v50, -inf }
0x10de   : > { %1999 = vmax.xlane.f32.xlu1 %v1998_v53  ;;  %v1992_v54 = vpop.f32.mrb[62].mxu0 }
0x10df   : > { %v2684_v55 = vpop.f32.mrb[63].mxu0 }
0x10ef   : > { %2067 = vrot.lane.b32.xlu1 %v3331_v12, %s3082_s26 }
0x10f3   : > { %2800 = vrot.lane.b32.xlu1 %v2799_v49, %s3083_s15  ;;  %s3649_s15 = scalar_lea.hbm %s3700_s5, %s2426_s9 }
0x10f7   : > { %2805 = vrot.lane.b32.xlu1 %v2804_v39, %s3084_s16 }
0x10fb   : > { %2815 = vrot.lane.b32.xlu1 %v2814_v29, %s3085_s10  ;;  %s2989_s10 = scalar_lea.vmem %s3643_s8, 256 }
0x10fc   : > { %p2990_p8 = scmp.ne.s32.totalorder %s3643_s8, %s2989_s10 }
0x10fe   : > { %p2991_p2 = pnand %p2990_p8, %p3714_p0 }
0x10ff   : > { %2825 = vrot.lane.b32.xlu1 %v2824_v37, %s3086_s28  ;;  %s3090_s28 = smov [#allocation8]  }
0x1100   : > { %p2992_p3 = pneg %p2991_p2 }
0x1169   : > { %v1997_v56 = vpop.xlane.xlu0 %1996 }
0x116a   : > { %v2001_v12 = vsub.f32 %v1939_v43, %v1997_v56 }
0x116b   : > { %v2000_v58 = vpop.xlane.xlu1 %1999 }
0x116c   : > { %v2003_v59 = vmul.f32 1.442695, %v2001_v12  ;;  %v2002_v60 = vsub.f32 %v1989_v50, %v2000_v58 }
0x116e   : > { %2895 = vpow2.f32 %v2003_v59  ;;  %v2005_v44 = vmul.f32 1.442695, %v2002_v60 }
0x116f   : > { %v2068_v48 = vpop.permute.xlu1 %2067 }
0x1170   : > { %2897 = vpow2.f32 %v2005_v44  ;;  %v2073_v49 = vsel %vm480_vm3, %v2068_v48, 0  ;;  %v2416_v44 = vld [vmem:[%s3699_s4] ss:$0 sm:$0xff] }
0x1171   : > { %2692 = vmatpush3.bf16.msra.mxu0 %v2073_v49 }
0x1173   : > { %v2801_v11 = vpop.permute.xlu1 %2800 }
0x1174   : > { %v2803_v15 = vunpack.i.h.bf16 %v2801_v11  ;;  %v2802_v17 = vunpack.i.l.bf16 %v2801_v11 }
0x1176   : > { %v2172_v25 = vsel %vm356_vm2, %v3389_v61, %v2803_v15  ;;  %v2171_v26 = vsel %vm356_vm2, %v3387_v57, %v2802_v17 }
0x1177   : > { %v2806_v13 = vpop.permute.xlu1 %2805 }
0x1178   : > { %v2896_v34 = vpop.eup %2895  ;;  %v2808_v16 = vunpack.i.h.bf16 %v2806_v13 }
0x1179   : > { %v2007_v38 = vsel %vm449_vm4, %v2896_v34, 0.0 }
0x117a   : > { %v2898_v39 = vpop.eup %2897  ;;  %2008 = vadd.xlane.f32.xlu0 %v2007_v38  ;;  %v2174_v36 = vsel %vm449_vm4, %v2172_v25, %v2808_v16 }
0x117b   : > { %v2010_v23 = vsel %vm449_vm4, %v2898_v39, 0.0  ;;  %v2816_v19 = vpop.permute.xlu1 %2815 }
0x117c   : > { %v2818_v43 = vunpack.i.h.bf16 %v2816_v19  ;;  %v2817_v45 = vunpack.i.l.bf16 %v2816_v19 }
0x117e   : > { %2011 = vadd.xlane.f32.xlu0 %v2010_v23 }
0x117f   : > { %v2826_v46 = vpop.permute.xlu1 %2825 }
0x1180   : > { %v2828_v57 = vunpack.i.h.bf16 %v2826_v46  ;;  %v2827_v52 = vunpack.i.l.bf16 %v2826_v46 }
0x1194   : > { %2019 = vrot.lane.b32.xlu0 %v3329_v9, %s3082_s26 }
0x1198   : > { %2810 = vrot.lane.b32.xlu0 %v2809_v32, %s3087_s12  ;;  %s2993_s12 = sshll.u32 %s3090_s28, 4  ;;  %s2994_s12 = int_to_ptr.vmem [resolvable:$false] %s2993_s12 }
0x1199   : > { %p2996_p7 = scmp.lt.s32.totalorder %s3643_s8, %s2994_s12 }
0x119c   : > { %2820 = vrot.lane.b32.xlu0 %v2819_v33, %s3088_s13  ;;  %s2995_s13 = scalar_lea.vmem %s2994_s12, 512 }
0x119d   : > { %p2997_p9 = scmp.lt.s32.totalorder %s2995_s13, %s2989_s10 }
0x119f   : > { %p2998_p12 = por %p2997_p9, %p2996_p7 }
0x11a1   : > { %p2999_p1 = pnand %p2998_p12, %p2992_p3 }
0x1207   : > { %v2009_v28 = vpop.xlane.xlu0 %2008 }
0x1208   : > { %2899 = vrcp.f32 %v2009_v28 }
0x120b   : > { %v2012_v29 = vpop.xlane.xlu0 %2011 }
0x120c   : > { %2901 = vrcp.f32 %v2012_v29 }
0x120f   : > { %v2020_v62 = vpop.permute.xlu0 %2019 }
0x1210   : > { %v2025_v63 = vsel %vm480_vm3, %v2020_v62, 0 }
0x1211   : > { %2686 = vmatpush3.bf16.msra.mxu1 %v2025_v63 }
0x1212   : > { %v2900_v1 = vpop.eup %2899  ;;  %2697 = vmatprep.subr.bf16.mxu1 %v3066_v0 }
0x1213   : > { %v2015_v9 = vmul.f32 %v2900_v1, %v2896_v34  ;;  %v2811_v14 = vpop.permute.xlu0 %2810 }
0x1214   : > { %v2813_v20 = vunpack.i.h.bf16 %v2811_v14  ;;  %v2812_v21 = vunpack.i.l.bf16 %v2811_v14 }
0x1215   : > { %v2017_v2 = vpack.c.bf16 %v2015_v9, %v2015_v9 }
0x1216   : > { %v2902_v27 = vpop.eup %2901  ;;  %v2177_v40 = vsel %vm2175_vm5, %v2174_v36, %v2813_v20 }
0x1217   : > { %v2016_v31 = vmul.f32 %v2902_v27, %v2898_v39  ;;  %2688 = vmatmul.mubr.msk.bf16.vlgmr.msra.gmra.mrb[60].mxu1 %vm449_vm4, %v2017_v2  ;;  %v2821_v24 = vpop.permute.xlu0 %2820  ;;  %v2180_v50 = vsel %vm2178_vm6, %v2177_v40, %v2818_v43 }
0x1218   : > { %2701 = vmatprep.mubr.msk.bf16.mxu1 %vm3067_vm0, %v3066_v0  ;;  %2698 = vmatpush3.bf16.msra.mxu1 %v2837_v22  ;;  %v2823_v41 = vunpack.i.h.bf16 %v2821_v24  ;;  %v2822_v42 = vunpack.i.l.bf16 %v2821_v24 }
0x1219   : > { %v2018_v32 = vpack.c.bf16 %v2016_v31, %v2016_v31  ;;  %2699 = vmatprep.subr.bf16.mxu1 %v3066_v0  ;;  %v2807_v0 = vunpack.i.l.bf16 %v2806_v13 }
0x121a   : > { %v2183_v51 = vsel %vm2181_vm7, %v2180_v50, %v2823_v41 }
0x121b   : > { %2694 = vmatmul.mubr.msk.bf16.vlgmr.msra.gmra.mrb[64].mxu0 %vm449_vm4, %v2018_v32  ;;  %v2173_v35 = vsel %vm449_vm4, %v2171_v26, %v2807_v0  ;;  %v2186_v12 = vsel %vm2184_vm8, %v2183_v51, %v2828_v57 }
0x121c   : > { %2700 = vmatpush3.bf16.msra.mxu1 %v2838_v30  ;;  %v2176_v37 = vsel %vm2175_vm5, %v2173_v35, %v2812_v21 }
0x121d   : > { %v2179_v47 = vsel %vm2178_vm6, %v2176_v37, %v2817_v45 }
0x121e   : > { %v2182_v61 = vsel %vm2181_vm7, %v2179_v47, %v2822_v42 }
0x121f   : > { %v2185_v56 = vsel %vm2184_vm8, %v2182_v61, %v2827_v52 }
0x12ea   : > { %v2061_v33 = vpop.f32.mrb[60].mxu1 }
0x12eb   : > { %v2689_v18 = vpop.f32.mrb[61].mxu1 }
0x12ec   : > { %v2064_v3 = vpop.f32.mrb[62].mxu1 }
0x12ed   : > { %v2690_v4 = vpop.f32.mrb[63].mxu1 }
0x12ee   : > { %v2109_v5 = vpop.f32.mrb[64].mxu0 }
0x12ef   : > { %v2829_v6 = vpack.i.bf16 %v2109_v5, %v2061_v33  ;;  %v2695_v7 = vpop.f32.mrb[65].mxu0 }
0x12f0   : > { %v2112_v8 = vpop.f32.mrb[66].mxu0 }
0x12f1   : > { %2830 = vrot.lane.b32.xlu0 %v2829_v6, %s3089_s30  ;;  %v2696_v10 = vpop.f32.mrb[67].mxu0 }
0x1363   : > { %v2831_v53 = vpop.permute.xlu0 %2830 }
0x1364   : > { %v2833_v54 = vunpack.i.h.bf16 %v2831_v53  ;;  %v2832_v55 = vunpack.i.l.bf16 %v2831_v53 }
0x1366   : > { %v2189_v58 = vsel %vm2187_vm9, %v2186_v12, %v2833_v54  ;;  %v2188_v59 = vsel %vm2187_vm9, %v2185_v56, %v2832_v55 }
0x1367   : > { %v2190_v60 = vpack.c.bf16 %v2189_v58, %v2188_v59 }
0x1369   : > { %2702 = vmatmul.mubr.msk.bf16.vlgmr.msra.gmra.mrb[64].mxu1 %vm305_vm1, %v2190_v60 }
0x143c   : > { %v2251_v48 = vpop.f32.mrb[64].mxu1 }
0x143d   : > { %v2252_v49 = vadd.f32 %v2416_v44, %v2251_v48  ;;  %v2703_v34 = vpop.f32.mrb[65].mxu1 }
0x143e   : > { %v2254_v38 = vpop.f32.mrb[66].mxu1 }
0x143f   : > { %2258 = vst.msk [vmem:[%s271_s6] sm:$0xff] %vm305_vm1, %v2252_v49  ;;  %v2255_v39 = vadd.f32 %v2416_v44, %v2254_v38  ;;  %v2704_v23 = vpop.f32.mrb[67].mxu1 }
0x1441   : > { %2259 = vst.msk [vmem:[%s271_s6 + $0x8] sm:$0xff] %vm305_vm1, %v2255_v39 }
0x1442   : > { %3002 = shalt.err (!%p2999_p1)
}
0x1443   : > { %s3003_s30 = scalar_lea.hbm %s3649_s15, 256  ;;  %s3007_s7 = scalar_lea.hbm %s3700_s5, 512 }
0x1444   : > { %p3004_p13 = scmp.ne.s32.totalorder %s3649_s15, %s3003_s30  ;;  %p3008_p4 = scmp.lt.u32.totalorder %s3649_s15, %s3700_s5 }
0x1445   : > { %p3009_p5 = scmp.lt.u32.totalorder %s3007_s7, %s3003_s30  ;;  %p3011_p8 = scmp.lt.u32.totalorder %s3003_s30, %s3649_s15 }
0x1446   : > { %p3005_p6 = pnand %p3004_p13, %p3714_p0 }
0x1447   : > { %p3010_p11 = por %p3009_p5, %p3008_p4 }
0x1448   : > { %p3006_p10 = pneg %p3005_p6 }
0x1449   : > { %p3012_p2 = por %p3011_p8, %p3010_p11 }
0x144b   : > { %p3013_p3 = pnand %p3012_p2, %p3006_p10 }
0x144d   : > { %3016 = shalt.err (!%p3013_p3)
}
0x144e   : > { %s3091_s24 = smov 128  }
0x144f   : > { %2715 = dma.vmem_to_hbm [thread:$0]  (%p3714_p0), %s3643_s8, 256, %s3649_s15, %s2261_s22, %s3091_s24, %s3091_s24, %s3084_s16  }
0x1450 PF: > { %s2289_s26 = sand.u32 1, %s3047_s18   ;;  %p3715_p7 = scmp.ne.s32.totalorder %s3705_s25, 0 }
0x1451   : > { %p3716_p9 = scmp.ge.s32.totalorder %s3059_s21, 2  ;;  %s2290_s10 = scalar_lea.sflag [#allocation4], %s2289_s26 }
0x1453   : > { %p2729_p12 = pnand %p3716_p9, %p3715_p7 }
0x1455   : > { %3042 = dma.done.wait (!%p2729_p12), %s2290_s10, 256  }
0x1456   : > { %3044 = vsyncadd (!%p2729_p12), %s2290_s10, 4294967040  ;;  %p19_p1 = scmp.ge.s32.totalorder %s3238_s29, 4   ;;  %s3717_s18 = smov %s3051_s19 }
0x1457   : > { %s3718_s19 = smov %s3055_s20  ;;  %s3719_s20 = smov %s3254_s27 }
0x1458   : > { %s3720_s21 = smov %s3238_s29  ;;  %21 = sbr.rel (!%p19_p1) target bundleno = 6 (0x6), region = 93 }
0x145f   :  { %2295 = vsyncpa [#allocation3], 1 }
0x1460   :  { %2297 = vsyncpa [#allocation3 + $0x1], 1 }
0x1461   :  { %2298 = vsyncpa [#allocation6], 1 }
0x1462   :  { %2299 = vsyncpa [#allocation4], 1 }
0x1463   :  { %2301 = vsyncpa [#allocation4 + $0x1], 1 }

</bundles_post_ra>
